<compile_context>
chip_gen: v7x
topology: tpu7x:2x2x1
jax: 0.10.0
libtpu: 0.0.40
codegen_flags: <defaults>
</compile_context>

<pallas_src>
import math

import jax
import jax.numpy as jnp
from jax import lax
from jax.experimental import pallas as pl
from jax.experimental.pallas import tpu as pltpu

# ----------------------------- small BERT config -----------------------------
VOCAB_SIZE = 100
TYPE_VOCAB_SIZE = 2
MAX_POS = 32
HIDDEN = 32
NUM_HEADS = 4
HEAD_DIM = HIDDEN // NUM_HEADS
INTERMEDIATE = 64
NUM_LAYERS = 2
NUM_CLASSES = 3
LN_EPS = 1e-12
ATTN_SCALE = 1.0 / math.sqrt(HEAD_DIM)


# ----------------------------- in-kernel helpers ------------------------------
def _gelu_tanh(x):
    # tanh-approx GELU (EUP-friendly); BERT's erf GELU differs by <1e-3.
    return 0.5 * x * (1.0 + jnp.tanh(0.7978845608028654 * (x + 0.044715 * x * x * x)))


def _layernorm(x, g, b):
    mu = jnp.mean(x, axis=-1, keepdims=True)
    xc = x - mu
    var = jnp.mean(xc * xc, axis=-1, keepdims=True)
    return xc * lax.rsqrt(var + LN_EPS) * g + b


# ----------------------------- fused forward kernel ---------------------------
def _bert_fwd_kernel(emb_ref, mask_ref,
                     emb_ln_g_ref, emb_ln_b_ref,
                     qkv_w_ref, qkv_b_ref, ao_w_ref, ao_b_ref,
                     ln1_g_ref, ln1_b_ref,
                     i_w_ref, i_b_ref, o_w_ref, o_b_ref,
                     ln2_g_ref, ln2_b_ref,
                     pool_w_ref, pool_b_ref, fc_w_ref, fc_b_ref,
                     logits_ref):
    """One grid step = full BERT forward for one batch row, everything VMEM-resident."""
    S = emb_ref.shape[1]
    f32 = jnp.float32

    # Embedding LayerNorm.
    x = _layernorm(emb_ref[0], emb_ln_g_ref[...], emb_ln_b_ref[...])       # (S, H)
    mask = mask_ref[...]                                                   # (1, 1, S) additive

    for li in range(NUM_LAYERS):                                           # static unroll (L=2)
        # ---- multi-head self-attention: all heads batched on the leading dim ----
        xh = jnp.broadcast_to(x[None, :, :], (NUM_HEADS, S, HIDDEN))       # (NH, S, H)
        qkv = lax.dot_general(xh, qkv_w_ref[li],
                              (((2,), (1,)), ((0,), (0,))),
                              preferred_element_type=f32) + qkv_b_ref[li]  # (NH, S, 3*Dh)
        q = qkv[:, :, 0:HEAD_DIM]
        k = qkv[:, :, HEAD_DIM:2 * HEAD_DIM]
        v = qkv[:, :, 2 * HEAD_DIM:3 * HEAD_DIM]

        # scores = q . k^T (transpose folded into the contraction dims), + mask
        s = lax.dot_general(q, k, (((2,), (2,)), ((0,), (0,))),
                            preferred_element_type=f32) * ATTN_SCALE + mask  # (NH, S, S)
        s = s - jnp.max(s, axis=-1, keepdims=True)
        p = jnp.exp(s)
        p = p * pl.reciprocal(jnp.sum(p, axis=-1, keepdims=True), approx=True)

        ctx = lax.dot_general(p, v, (((2,), (1,)), ((0,), (0,))),
                              preferred_element_type=f32)                  # (NH, S, Dh)

        # attention output projection: per-head contribution then sum over heads
        attn = lax.dot_general(ctx, ao_w_ref[li], (((2,), (1,)), ((0,), (0,))),
                               preferred_element_type=f32)                 # (NH, S, H)
        attn = jnp.sum(attn, axis=0) + ao_b_ref[li]                        # (S, H)

        # residual + LayerNorm fused in-kernel (dropout = identity)
        x = _layernorm(attn + x, ln1_g_ref[li], ln1_b_ref[li])

        # ---- feed-forward ----
        h = jnp.dot(x, i_w_ref[li], preferred_element_type=f32) + i_b_ref[li]   # (S, I)
        h = _gelu_tanh(h)
        ffn = jnp.dot(h, o_w_ref[li], preferred_element_type=f32) + o_b_ref[li]  # (S, H)
        x = _layernorm(ffn + x, ln2_g_ref[li], ln2_b_ref[li])

    # ---- pooler (tanh of CLS token) + dropout(identity) + classifier head ----
    cls = x[0:1, :]                                                         # (1, H)
    pooled = jnp.tanh(jnp.dot(cls, pool_w_ref[...], preferred_element_type=f32)
                      + pool_b_ref[...])                                    # (1, H)
    logits = jnp.dot(pooled, fc_w_ref[...], preferred_element_type=f32) + fc_b_ref[...]
    logits_ref[0] = logits.astype(logits_ref.dtype)                         # (1, C)


# ----------------------------- parameter init (PyTorch-shaped) ----------------
def _dense_init(key, fan_in, fan_out):
    kw, _ = jax.random.split(key)
    w = jax.random.normal(kw, (fan_in, fan_out), jnp.float32) * 0.02
    b = jnp.zeros((fan_out,), jnp.float32)
    return w, b


def init_params(key):
    keys = jax.random.split(key, 8 + NUM_LAYERS)
    p = {
        "word_emb": jax.random.normal(keys[0], (VOCAB_SIZE, HIDDEN), jnp.float32) * 0.02,
        "pos_emb": jax.random.normal(keys[1], (MAX_POS, HIDDEN), jnp.float32) * 0.02,
        "type_emb": jax.random.normal(keys[2], (TYPE_VOCAB_SIZE, HIDDEN), jnp.float32) * 0.02,
        "emb_ln_g": jnp.ones((HIDDEN,), jnp.float32),
        "emb_ln_b": jnp.zeros((HIDDEN,), jnp.float32),
    }
    layers = []
    for li in range(NUM_LAYERS):
        lk = jax.random.split(keys[3 + li], 6)
        qw, qb = _dense_init(lk[0], HIDDEN, HIDDEN)
        kw, kb = _dense_init(lk[1], HIDDEN, HIDDEN)
        vw, vb = _dense_init(lk[2], HIDDEN, HIDDEN)
        aow, aob = _dense_init(lk[3], HIDDEN, HIDDEN)
        iw, ib = _dense_init(lk[4], HIDDEN, INTERMEDIATE)
        ow, ob = _dense_init(lk[5], INTERMEDIATE, HIDDEN)
        layers.append({
            "q_w": qw, "q_b": qb, "k_w": kw, "k_b": kb, "v_w": vw, "v_b": vb,
            "ao_w": aow, "ao_b": aob,
            "ln1_g": jnp.ones((HIDDEN,), jnp.float32), "ln1_b": jnp.zeros((HIDDEN,), jnp.float32),
            "i_w": iw, "i_b": ib, "o_w": ow, "o_b": ob,
            "ln2_g": jnp.ones((HIDDEN,), jnp.float32), "ln2_b": jnp.zeros((HIDDEN,), jnp.float32),
        })
    p["layers"] = layers
    p["pooler_w"], p["pooler_b"] = _dense_init(keys[3 + NUM_LAYERS], HIDDEN, HIDDEN)
    p["fc_w"], p["fc_b"] = _dense_init(keys[4 + NUM_LAYERS], HIDDEN, NUM_CLASSES)
    return p


# ----------------------------- weight repacking for the fused kernel ----------
def pack_params(p):
    """Repack PyTorch-shaped params into stacked, head-major kernel operands."""
    def head_major(w):                       # (H, H) -> (NH, H, Dh)
        return w.reshape(HIDDEN, NUM_HEADS, HEAD_DIM).transpose(1, 0, 2)

    def head_bias(b):                        # (H,) -> (NH, 1, Dh)
        return b.reshape(NUM_HEADS, 1, HEAD_DIM)

    L = p["layers"]
    return {
        "emb_ln_g": p["emb_ln_g"].reshape(1, HIDDEN),
        "emb_ln_b": p["emb_ln_b"].reshape(1, HIDDEN),
        "qkv_w": jnp.stack([jnp.concatenate(
            [head_major(l["q_w"]), head_major(l["k_w"]), head_major(l["v_w"])],
            axis=-1) for l in L]),                                          # (L, NH, H, 3*Dh)
        "qkv_b": jnp.stack([jnp.concatenate(
            [head_bias(l["q_b"]), head_bias(l["k_b"]), head_bias(l["v_b"])],
            axis=-1) for l in L]),                                          # (L, NH, 1, 3*Dh)
        "ao_w": jnp.stack([l["ao_w"].reshape(NUM_HEADS, HEAD_DIM, HIDDEN) for l in L]),
        "ao_b": jnp.stack([l["ao_b"].reshape(1, HIDDEN) for l in L]),
        "ln1_g": jnp.stack([l["ln1_g"].reshape(1, HIDDEN) for l in L]),
        "ln1_b": jnp.stack([l["ln1_b"].reshape(1, HIDDEN) for l in L]),
        "i_w": jnp.stack([l["i_w"] for l in L]),                            # (L, H, I)
        "i_b": jnp.stack([l["i_b"].reshape(1, INTERMEDIATE) for l in L]),
        "o_w": jnp.stack([l["o_w"] for l in L]),                            # (L, I, H)
        "o_b": jnp.stack([l["o_b"].reshape(1, HIDDEN) for l in L]),
        "ln2_g": jnp.stack([l["ln2_g"].reshape(1, HIDDEN) for l in L]),
        "ln2_b": jnp.stack([l["ln2_b"].reshape(1, HIDDEN) for l in L]),
        "pool_w": p["pooler_w"],
        "pool_b": p["pooler_b"].reshape(1, HIDDEN),
        "fc_w": p["fc_w"],
        "fc_b": p["fc_b"].reshape(1, NUM_CLASSES),
    }


_PACK_ORDER = ("emb_ln_g", "emb_ln_b", "qkv_w", "qkv_b", "ao_w", "ao_b",
               "ln1_g", "ln1_b", "i_w", "i_b", "o_w", "o_b", "ln2_g", "ln2_b",
               "pool_w", "pool_b", "fc_w", "fc_b")


def _full_spec(shape):
    nd = len(shape)
    return pl.BlockSpec(shape, lambda b, _nd=nd: (0,) * _nd)


def fused_bert_forward(emb, ext_mask, packed):
    """emb: (B, S, H) f32, ext_mask: (B, 1, S) additive f32 -> logits (B, C)."""
    B, S, H = emb.shape
    weight_args = [packed[k] for k in _PACK_ORDER]
    in_specs = ([pl.BlockSpec((1, S, H), lambda b: (b, 0, 0)),
                 pl.BlockSpec((1, 1, S), lambda b: (b, 0, 0))]
                + [_full_spec(tuple(w.shape)) for w in weight_args])
    out = pl.pallas_call(
        _bert_fwd_kernel,
        out_shape=jax.ShapeDtypeStruct((B, 1, NUM_CLASSES), jnp.float32),
        grid=(B,),
        in_specs=in_specs,
        out_specs=pl.BlockSpec((1, 1, NUM_CLASSES), lambda b: (b, 0, 0)),
        compiler_params=pltpu.CompilerParams(dimension_semantics=("parallel",)),
    )(emb, ext_mask, *weight_args)
    return out.reshape(B, NUM_CLASSES)


# ----------------------------- top-level forward -------------------------------
@jax.jit
def bert_classifier_forward(params, input_ids, attention_mask, token_type_ids):
    B, S = input_ids.shape
    pos_ids = jnp.arange(S, dtype=jnp.int32)[None, :]

    # embedding gathers stay in JAX (glue); everything else runs in ONE Pallas kernel
    emb = (params["word_emb"][input_ids]
           + params["pos_emb"][pos_ids]
           + params["type_emb"][token_type_ids]).astype(jnp.float32)       # (B, S, H)
    ext_mask = ((1.0 - attention_mask.astype(jnp.float32)) * -10000.0).reshape(B, 1, S)

    packed = pack_params(params)
    return fused_bert_forward(emb, ext_mask, packed)


# ----------------------------- main --------------------------------------------
if __name__ == "__main__":
    key = jax.random.PRNGKey(0)
    k_par, k_ids, _ = jax.random.split(key, 3)

    B, S = 2, 8
    params = init_params(k_par)

    input_ids = jax.random.randint(k_ids, (B, S), 0, VOCAB_SIZE, dtype=jnp.int32)
    attention_mask = jnp.ones((B, S), dtype=jnp.int32).at[1, 6:].set(0)  # pad tail of row 1
    token_type_ids = jnp.zeros((B, S), dtype=jnp.int32)

    logits = bert_classifier_forward(params, input_ids, attention_mask, token_type_ids)
    logits = jax.block_until_ready(logits)

    assert logits.shape == (B, NUM_CLASSES)
    assert bool(jnp.all(jnp.isfinite(logits)))
    print("KERNEL_OK")
</pallas_src>

<mosaic_0001>
module attributes {stable_mosaic.version = 11 : i64} {
  func.func @_bert_fwd_kernel(%arg0: i32, %arg1: memref<1x8x32xf32, #tpu.memory_space<vmem>>, %arg2: memref<1x1x8xf32, #tpu.memory_space<vmem>>, %arg3: memref<1x32xf32, #tpu.memory_space<vmem>>, %arg4: memref<1x32xf32, #tpu.memory_space<vmem>>, %arg5: memref<2x4x32x24xf32, #tpu.memory_space<vmem>>, %arg6: memref<2x4x1x24xf32, #tpu.memory_space<vmem>>, %arg7: memref<2x4x8x32xf32, #tpu.memory_space<vmem>>, %arg8: memref<2x1x32xf32, #tpu.memory_space<vmem>>, %arg9: memref<2x1x32xf32, #tpu.memory_space<vmem>>, %arg10: memref<2x1x32xf32, #tpu.memory_space<vmem>>, %arg11: memref<2x32x64xf32, #tpu.memory_space<vmem>>, %arg12: memref<2x1x64xf32, #tpu.memory_space<vmem>>, %arg13: memref<2x64x32xf32, #tpu.memory_space<vmem>>, %arg14: memref<2x1x32xf32, #tpu.memory_space<vmem>>, %arg15: memref<2x1x32xf32, #tpu.memory_space<vmem>>, %arg16: memref<2x1x32xf32, #tpu.memory_space<vmem>>, %arg17: memref<32x32xf32, #tpu.memory_space<vmem>>, %arg18: memref<1x32xf32, #tpu.memory_space<vmem>>, %arg19: memref<32x3xf32, #tpu.memory_space<vmem>>, %arg20: memref<1x3xf32, #tpu.memory_space<vmem>>, %arg21: memref<1x1x3xf32, #tpu.memory_space<vmem>>) attributes {dimension_semantics = [#tpu.dimension_semantics<parallel>], iteration_bounds = array<i64: 2>, scalar_prefetch = 0 : i64, scratch_operands = 0 : i64, tpu.core_type = #tpu.core_type<tc>, window_params = [{transform_indices = @transform_0, window_bounds = array<i64: 1, 8, 32>}, {transform_indices = @transform_1, window_bounds = array<i64: 1, 1, 8>}, {pipeline_mode = #tpu.pipeline_mode<synchronous>, transform_indices = @transform_2, window_bounds = array<i64: 1, 32>}, {pipeline_mode = #tpu.pipeline_mode<synchronous>, transform_indices = @transform_3, window_bounds = array<i64: 1, 32>}, {pipeline_mode = #tpu.pipeline_mode<synchronous>, transform_indices = @transform_4, window_bounds = array<i64: 2, 4, 32, 24>}, {pipeline_mode = #tpu.pipeline_mode<synchronous>, transform_indices = @transform_5, window_bounds = array<i64: 2, 4, 1, 24>}, {pipeline_mode = #tpu.pipeline_mode<synchronous>, transform_indices = @transform_6, window_bounds = array<i64: 2, 4, 8, 32>}, {pipeline_mode = #tpu.pipeline_mode<synchronous>, transform_indices = @transform_7, window_bounds = array<i64: 2, 1, 32>}, {pipeline_mode = #tpu.pipeline_mode<synchronous>, transform_indices = @transform_8, window_bounds = array<i64: 2, 1, 32>}, {pipeline_mode = #tpu.pipeline_mode<synchronous>, transform_indices = @transform_9, window_bounds = array<i64: 2, 1, 32>}, {pipeline_mode = #tpu.pipeline_mode<synchronous>, transform_indices = @transform_10, window_bounds = array<i64: 2, 32, 64>}, {pipeline_mode = #tpu.pipeline_mode<synchronous>, transform_indices = @transform_11, window_bounds = array<i64: 2, 1, 64>}, {pipeline_mode = #tpu.pipeline_mode<synchronous>, transform_indices = @transform_12, window_bounds = array<i64: 2, 64, 32>}, {pipeline_mode = #tpu.pipeline_mode<synchronous>, transform_indices = @transform_13, window_bounds = array<i64: 2, 1, 32>}, {pipeline_mode = #tpu.pipeline_mode<synchronous>, transform_indices = @transform_14, window_bounds = array<i64: 2, 1, 32>}, {pipeline_mode = #tpu.pipeline_mode<synchronous>, transform_indices = @transform_15, window_bounds = array<i64: 2, 1, 32>}, {pipeline_mode = #tpu.pipeline_mode<synchronous>, transform_indices = @transform_16, window_bounds = array<i64: 32, 32>}, {pipeline_mode = #tpu.pipeline_mode<synchronous>, transform_indices = @transform_17, window_bounds = array<i64: 1, 32>}, {pipeline_mode = #tpu.pipeline_mode<synchronous>, transform_indices = @transform_18, window_bounds = array<i64: 32, 3>}, {pipeline_mode = #tpu.pipeline_mode<synchronous>, transform_indices = @transform_19, window_bounds = array<i64: 1, 3>}, {transform_indices = @transform_20, window_bounds = array<i64: 1, 1, 3>}]} {
    %c0 = arith.constant 0 : index
    %c0_0 = arith.constant 0 : index
    %c0_1 = arith.constant 0 : index
    %0 = vector.load %arg1[%c0, %c0_0, %c0_1] : memref<1x8x32xf32, #tpu.memory_space<vmem>>, vector<1x8x32xf32>
    %1 = vector.shape_cast %0 : vector<1x8x32xf32> to vector<8x32xf32>
    %c0_2 = arith.constant 0 : index
    %c0_3 = arith.constant 0 : index
    %2 = vector.load %arg3[%c0_2, %c0_3] : memref<1x32xf32, #tpu.memory_space<vmem>>, vector<1x32xf32>
    %c0_4 = arith.constant 0 : index
    %c0_5 = arith.constant 0 : index
    %3 = vector.load %arg4[%c0_4, %c0_5] : memref<1x32xf32, #tpu.memory_space<vmem>>, vector<1x32xf32>
    %cst = arith.constant dense<0.000000e+00> : vector<8xf32>
    %4 = vector.multi_reduction <add>, %1, %cst [1] : vector<8x32xf32> to vector<8xf32>
    %5 = vector.shape_cast %4 : vector<8xf32> to vector<8x1xf32>
    %cst_6 = arith.constant 3.200000e+01 : f32
    %6 = vector.broadcast %cst_6 : f32 to vector<8x1xf32>
    %7 = arith.divf %5, %6 : vector<8x1xf32>
    %8 = vector.broadcast %7 : vector<8x1xf32> to vector<8x32xf32>
    %9 = arith.subf %1, %8 : vector<8x32xf32>
    %10 = arith.mulf %9, %9 : vector<8x32xf32>
    %cst_7 = arith.constant dense<0.000000e+00> : vector<8xf32>
    %11 = vector.multi_reduction <add>, %10, %cst_7 [1] : vector<8x32xf32> to vector<8xf32>
    %12 = vector.shape_cast %11 : vector<8xf32> to vector<8x1xf32>
    %cst_8 = arith.constant 3.200000e+01 : f32
    %13 = vector.broadcast %cst_8 : f32 to vector<8x1xf32>
    %14 = arith.divf %12, %13 : vector<8x1xf32>
    %cst_9 = arith.constant 9.99999996E-13 : f32
    %15 = vector.broadcast %cst_9 : f32 to vector<8x1xf32>
    %16 = arith.addf %14, %15 : vector<8x1xf32>
    %17 = math.rsqrt %16 : vector<8x1xf32>
    %18 = vector.broadcast %17 : vector<8x1xf32> to vector<8x32xf32>
    %19 = arith.mulf %9, %18 : vector<8x32xf32>
    %20 = vector.broadcast %2 : vector<1x32xf32> to vector<8x32xf32>
    %21 = arith.mulf %19, %20 : vector<8x32xf32>
    %22 = vector.broadcast %3 : vector<1x32xf32> to vector<8x32xf32>
    %23 = arith.addf %21, %22 : vector<8x32xf32>
    %c0_10 = arith.constant 0 : index
    %c0_11 = arith.constant 0 : index
    %c0_12 = arith.constant 0 : index
    %24 = vector.load %arg2[%c0_10, %c0_11, %c0_12] : memref<1x1x8xf32, #tpu.memory_space<vmem>>, vector<1x1x8xf32>
    %25 = vector.shape_cast %23 : vector<8x32xf32> to vector<1x8x32xf32>
    %26 = vector.shape_cast %25 : vector<1x8x32xf32> to vector<1x8x32xf32>
    %27 = vector.broadcast %26 : vector<1x8x32xf32> to vector<4x8x32xf32>
    %c0_13 = arith.constant 0 : index
    %c0_14 = arith.constant 0 : index
    %c0_15 = arith.constant 0 : index
    %c0_16 = arith.constant 0 : index
    %28 = vector.load %arg5[%c0_13, %c0_14, %c0_15, %c0_16] : memref<2x4x32x24xf32, #tpu.memory_space<vmem>>, vector<1x4x32x24xf32>
    %29 = vector.shape_cast %28 : vector<1x4x32x24xf32> to vector<4x32x24xf32>
    %cst_17 = arith.constant dense<0.000000e+00> : vector<4x8x24xf32>
    %30 = tpu.matmul %27, %29, %cst_17 {dimension_numbers = #tpu.dot_dimension_numbers<[2], [1], [1], [2], [0, 0, 0, 1, 1, 2], [0], [0]>} : vector<4x8x32xf32>, vector<4x32x24xf32>, vector<4x8x24xf32> -> vector<4x8x24xf32>
    %c0_18 = arith.constant 0 : index
    %c0_19 = arith.constant 0 : index
    %c0_20 = arith.constant 0 : index
    %c0_21 = arith.constant 0 : index
    %31 = vector.load %arg6[%c0_18, %c0_19, %c0_20, %c0_21] : memref<2x4x1x24xf32, #tpu.memory_space<vmem>>, vector<1x4x1x24xf32>
    %32 = vector.shape_cast %31 : vector<1x4x1x24xf32> to vector<4x1x24xf32>
    %33 = vector.broadcast %32 : vector<4x1x24xf32> to vector<4x8x24xf32>
    %34 = arith.addf %30, %33 : vector<4x8x24xf32>
    %35 = vector.extract_strided_slice %34 {offsets = [0, 0, 0], sizes = [4, 8, 8], strides = [1, 1, 1]} : vector<4x8x24xf32> to vector<4x8x8xf32>
    %36 = vector.extract_strided_slice %34 {offsets = [0, 0, 8], sizes = [4, 8, 8], strides = [1, 1, 1]} : vector<4x8x24xf32> to vector<4x8x8xf32>
    %37 = vector.extract_strided_slice %34 {offsets = [0, 0, 16], sizes = [4, 8, 8], strides = [1, 1, 1]} : vector<4x8x24xf32> to vector<4x8x8xf32>
    %cst_22 = arith.constant dense<0.000000e+00> : vector<4x8x8xf32>
    %38 = tpu.matmul %35, %36, %cst_22 {dimension_numbers = #tpu.dot_dimension_numbers<[2], [2], [1], [1], [0, 0, 0, 1, 1, 1], [0], [0]>} : vector<4x8x8xf32>, vector<4x8x8xf32>, vector<4x8x8xf32> -> vector<4x8x8xf32>
    %cst_23 = arith.constant 0.353553385 : f32
    %39 = vector.broadcast %cst_23 : f32 to vector<4x8x8xf32>
    %40 = arith.mulf %38, %39 : vector<4x8x8xf32>
    %41 = vector.broadcast %24 : vector<1x1x8xf32> to vector<4x8x8xf32>
    %42 = arith.addf %40, %41 : vector<4x8x8xf32>
    %cst_24 = arith.constant dense<0xFF800000> : vector<4x8xf32>
    %43 = vector.multi_reduction <maximumf>, %42, %cst_24 [2] : vector<4x8x8xf32> to vector<4x8xf32>
    %44 = vector.shape_cast %43 : vector<4x8xf32> to vector<4x8x1xf32>
    %45 = vector.broadcast %44 : vector<4x8x1xf32> to vector<4x8x8xf32>
    %46 = arith.subf %42, %45 : vector<4x8x8xf32>
    %47 = math.exp %46 : vector<4x8x8xf32>
    %cst_25 = arith.constant dense<0.000000e+00> : vector<4x8xf32>
    %48 = vector.multi_reduction <add>, %47, %cst_25 [2] : vector<4x8x8xf32> to vector<4x8xf32>
    %49 = vector.shape_cast %48 : vector<4x8xf32> to vector<4x8x1xf32>
    %50 = tpu.reciprocal %49 {approx = true} : vector<4x8x1xf32> -> vector<4x8x1xf32>
    %51 = vector.broadcast %50 : vector<4x8x1xf32> to vector<4x8x8xf32>
    %52 = arith.mulf %47, %51 : vector<4x8x8xf32>
    %cst_26 = arith.constant dense<0.000000e+00> : vector<4x8x8xf32>
    %53 = tpu.matmul %52, %37, %cst_26 {dimension_numbers = #tpu.dot_dimension_numbers<[2], [1], [1], [2], [0, 0, 0, 1, 1, 2], [0], [0]>} : vector<4x8x8xf32>, vector<4x8x8xf32>, vector<4x8x8xf32> -> vector<4x8x8xf32>
    %c0_27 = arith.constant 0 : index
    %c0_28 = arith.constant 0 : index
    %c0_29 = arith.constant 0 : index
    %c0_30 = arith.constant 0 : index
    %54 = vector.load %arg7[%c0_27, %c0_28, %c0_29, %c0_30] : memref<2x4x8x32xf32, #tpu.memory_space<vmem>>, vector<1x4x8x32xf32>
    %55 = vector.shape_cast %54 : vector<1x4x8x32xf32> to vector<4x8x32xf32>
    %cst_31 = arith.constant dense<0.000000e+00> : vector<4x8x32xf32>
    %56 = tpu.matmul %53, %55, %cst_31 {dimension_numbers = #tpu.dot_dimension_numbers<[2], [1], [1], [2], [0, 0, 0, 1, 1, 2], [0], [0]>} : vector<4x8x8xf32>, vector<4x8x32xf32>, vector<4x8x32xf32> -> vector<4x8x32xf32>
    %cst_32 = arith.constant dense<0.000000e+00> : vector<8x32xf32>
    %57 = vector.multi_reduction <add>, %56, %cst_32 [0] : vector<4x8x32xf32> to vector<8x32xf32>
    %c0_33 = arith.constant 0 : index
    %c0_34 = arith.constant 0 : index
    %c0_35 = arith.constant 0 : index
    %58 = vector.load %arg8[%c0_33, %c0_34, %c0_35] : memref<2x1x32xf32, #tpu.memory_space<vmem>>, vector<1x1x32xf32>
    %59 = vector.shape_cast %58 : vector<1x1x32xf32> to vector<1x32xf32>
    %60 = vector.broadcast %59 : vector<1x32xf32> to vector<8x32xf32>
    %61 = arith.addf %57, %60 : vector<8x32xf32>
    %62 = arith.addf %61, %23 : vector<8x32xf32>
    %c0_36 = arith.constant 0 : index
    %c0_37 = arith.constant 0 : index
    %c0_38 = arith.constant 0 : index
    %63 = vector.load %arg9[%c0_36, %c0_37, %c0_38] : memref<2x1x32xf32, #tpu.memory_space<vmem>>, vector<1x1x32xf32>
    %64 = vector.shape_cast %63 : vector<1x1x32xf32> to vector<1x32xf32>
    %c0_39 = arith.constant 0 : index
    %c0_40 = arith.constant 0 : index
    %c0_41 = arith.constant 0 : index
    %65 = vector.load %arg10[%c0_39, %c0_40, %c0_41] : memref<2x1x32xf32, #tpu.memory_space<vmem>>, vector<1x1x32xf32>
    %66 = vector.shape_cast %65 : vector<1x1x32xf32> to vector<1x32xf32>
    %cst_42 = arith.constant dense<0.000000e+00> : vector<8xf32>
    %67 = vector.multi_reduction <add>, %62, %cst_42 [1] : vector<8x32xf32> to vector<8xf32>
    %68 = vector.shape_cast %67 : vector<8xf32> to vector<8x1xf32>
    %cst_43 = arith.constant 3.200000e+01 : f32
    %69 = vector.broadcast %cst_43 : f32 to vector<8x1xf32>
    %70 = arith.divf %68, %69 : vector<8x1xf32>
    %71 = vector.broadcast %70 : vector<8x1xf32> to vector<8x32xf32>
    %72 = arith.subf %62, %71 : vector<8x32xf32>
    %73 = arith.mulf %72, %72 : vector<8x32xf32>
    %cst_44 = arith.constant dense<0.000000e+00> : vector<8xf32>
    %74 = vector.multi_reduction <add>, %73, %cst_44 [1] : vector<8x32xf32> to vector<8xf32>
    %75 = vector.shape_cast %74 : vector<8xf32> to vector<8x1xf32>
    %cst_45 = arith.constant 3.200000e+01 : f32
    %76 = vector.broadcast %cst_45 : f32 to vector<8x1xf32>
    %77 = arith.divf %75, %76 : vector<8x1xf32>
    %cst_46 = arith.constant 9.99999996E-13 : f32
    %78 = vector.broadcast %cst_46 : f32 to vector<8x1xf32>
    %79 = arith.addf %77, %78 : vector<8x1xf32>
    %80 = math.rsqrt %79 : vector<8x1xf32>
    %81 = vector.broadcast %80 : vector<8x1xf32> to vector<8x32xf32>
    %82 = arith.mulf %72, %81 : vector<8x32xf32>
    %83 = vector.broadcast %64 : vector<1x32xf32> to vector<8x32xf32>
    %84 = arith.mulf %82, %83 : vector<8x32xf32>
    %85 = vector.broadcast %66 : vector<1x32xf32> to vector<8x32xf32>
    %86 = arith.addf %84, %85 : vector<8x32xf32>
    %c0_47 = arith.constant 0 : index
    %c0_48 = arith.constant 0 : index
    %c0_49 = arith.constant 0 : index
    %87 = vector.load %arg11[%c0_47, %c0_48, %c0_49] : memref<2x32x64xf32, #tpu.memory_space<vmem>>, vector<1x32x64xf32>
    %88 = vector.shape_cast %87 : vector<1x32x64xf32> to vector<32x64xf32>
    %cst_50 = arith.constant dense<0.000000e+00> : vector<8x64xf32>
    %89 = tpu.matmul %86, %88, %cst_50 {dimension_numbers = #tpu.dot_dimension_numbers<[1], [0], [0], [1], [0, 0, 1, 1], [], []>} : vector<8x32xf32>, vector<32x64xf32>, vector<8x64xf32> -> vector<8x64xf32>
    %c0_51 = arith.constant 0 : index
    %c0_52 = arith.constant 0 : index
    %c0_53 = arith.constant 0 : index
    %90 = vector.load %arg12[%c0_51, %c0_52, %c0_53] : memref<2x1x64xf32, #tpu.memory_space<vmem>>, vector<1x1x64xf32>
    %91 = vector.shape_cast %90 : vector<1x1x64xf32> to vector<1x64xf32>
    %92 = vector.broadcast %91 : vector<1x64xf32> to vector<8x64xf32>
    %93 = arith.addf %89, %92 : vector<8x64xf32>
    %cst_54 = arith.constant 5.000000e-01 : f32
    %94 = vector.broadcast %cst_54 : f32 to vector<8x64xf32>
    %95 = arith.mulf %94, %93 : vector<8x64xf32>
    %cst_55 = arith.constant 4.471500e-02 : f32
    %96 = vector.broadcast %cst_55 : f32 to vector<8x64xf32>
    %97 = arith.mulf %96, %93 : vector<8x64xf32>
    %98 = arith.mulf %97, %93 : vector<8x64xf32>
    %99 = arith.mulf %98, %93 : vector<8x64xf32>
    %100 = arith.addf %93, %99 : vector<8x64xf32>
    %cst_56 = arith.constant 0.797884583 : f32
    %101 = vector.broadcast %cst_56 : f32 to vector<8x64xf32>
    %102 = arith.mulf %101, %100 : vector<8x64xf32>
    %103 = math.tanh %102 : vector<8x64xf32>
    %cst_57 = arith.constant 1.000000e+00 : f32
    %104 = vector.broadcast %cst_57 : f32 to vector<8x64xf32>
    %105 = arith.addf %104, %103 : vector<8x64xf32>
    %106 = arith.mulf %95, %105 : vector<8x64xf32>
    %c0_58 = arith.constant 0 : index
    %c0_59 = arith.constant 0 : index
    %c0_60 = arith.constant 0 : index
    %107 = vector.load %arg13[%c0_58, %c0_59, %c0_60] : memref<2x64x32xf32, #tpu.memory_space<vmem>>, vector<1x64x32xf32>
    %108 = vector.shape_cast %107 : vector<1x64x32xf32> to vector<64x32xf32>
    %cst_61 = arith.constant dense<0.000000e+00> : vector<8x32xf32>
    %109 = tpu.matmul %106, %108, %cst_61 {dimension_numbers = #tpu.dot_dimension_numbers<[1], [0], [0], [1], [0, 0, 1, 1], [], []>} : vector<8x64xf32>, vector<64x32xf32>, vector<8x32xf32> -> vector<8x32xf32>
    %c0_62 = arith.constant 0 : index
    %c0_63 = arith.constant 0 : index
    %c0_64 = arith.constant 0 : index
    %110 = vector.load %arg14[%c0_62, %c0_63, %c0_64] : memref<2x1x32xf32, #tpu.memory_space<vmem>>, vector<1x1x32xf32>
    %111 = vector.shape_cast %110 : vector<1x1x32xf32> to vector<1x32xf32>
    %112 = vector.broadcast %111 : vector<1x32xf32> to vector<8x32xf32>
    %113 = arith.addf %109, %112 : vector<8x32xf32>
    %114 = arith.addf %113, %86 : vector<8x32xf32>
    %c0_65 = arith.constant 0 : index
    %c0_66 = arith.constant 0 : index
    %c0_67 = arith.constant 0 : index
    %115 = vector.load %arg15[%c0_65, %c0_66, %c0_67] : memref<2x1x32xf32, #tpu.memory_space<vmem>>, vector<1x1x32xf32>
    %116 = vector.shape_cast %115 : vector<1x1x32xf32> to vector<1x32xf32>
    %c0_68 = arith.constant 0 : index
    %c0_69 = arith.constant 0 : index
    %c0_70 = arith.constant 0 : index
    %117 = vector.load %arg16[%c0_68, %c0_69, %c0_70] : memref<2x1x32xf32, #tpu.memory_space<vmem>>, vector<1x1x32xf32>
    %118 = vector.shape_cast %117 : vector<1x1x32xf32> to vector<1x32xf32>
    %cst_71 = arith.constant dense<0.000000e+00> : vector<8xf32>
    %119 = vector.multi_reduction <add>, %114, %cst_71 [1] : vector<8x32xf32> to vector<8xf32>
    %120 = vector.shape_cast %119 : vector<8xf32> to vector<8x1xf32>
    %cst_72 = arith.constant 3.200000e+01 : f32
    %121 = vector.broadcast %cst_72 : f32 to vector<8x1xf32>
    %122 = arith.divf %120, %121 : vector<8x1xf32>
    %123 = vector.broadcast %122 : vector<8x1xf32> to vector<8x32xf32>
    %124 = arith.subf %114, %123 : vector<8x32xf32>
    %125 = arith.mulf %124, %124 : vector<8x32xf32>
    %cst_73 = arith.constant dense<0.000000e+00> : vector<8xf32>
    %126 = vector.multi_reduction <add>, %125, %cst_73 [1] : vector<8x32xf32> to vector<8xf32>
    %127 = vector.shape_cast %126 : vector<8xf32> to vector<8x1xf32>
    %cst_74 = arith.constant 3.200000e+01 : f32
    %128 = vector.broadcast %cst_74 : f32 to vector<8x1xf32>
    %129 = arith.divf %127, %128 : vector<8x1xf32>
    %cst_75 = arith.constant 9.99999996E-13 : f32
    %130 = vector.broadcast %cst_75 : f32 to vector<8x1xf32>
    %131 = arith.addf %129, %130 : vector<8x1xf32>
    %132 = math.rsqrt %131 : vector<8x1xf32>
    %133 = vector.broadcast %132 : vector<8x1xf32> to vector<8x32xf32>
    %134 = arith.mulf %124, %133 : vector<8x32xf32>
    %135 = vector.broadcast %116 : vector<1x32xf32> to vector<8x32xf32>
    %136 = arith.mulf %134, %135 : vector<8x32xf32>
    %137 = vector.broadcast %118 : vector<1x32xf32> to vector<8x32xf32>
    %138 = arith.addf %136, %137 : vector<8x32xf32>
    %139 = vector.shape_cast %138 : vector<8x32xf32> to vector<1x8x32xf32>
    %140 = vector.shape_cast %139 : vector<1x8x32xf32> to vector<1x8x32xf32>
    %141 = vector.broadcast %140 : vector<1x8x32xf32> to vector<4x8x32xf32>
    %c1 = arith.constant 1 : index
    %c0_76 = arith.constant 0 : index
    %c0_77 = arith.constant 0 : index
    %c0_78 = arith.constant 0 : index
    %142 = vector.load %arg5[%c1, %c0_76, %c0_77, %c0_78] : memref<2x4x32x24xf32, #tpu.memory_space<vmem>>, vector<1x4x32x24xf32>
    %143 = vector.shape_cast %142 : vector<1x4x32x24xf32> to vector<4x32x24xf32>
    %cst_79 = arith.constant dense<0.000000e+00> : vector<4x8x24xf32>
    %144 = tpu.matmul %141, %143, %cst_79 {dimension_numbers = #tpu.dot_dimension_numbers<[2], [1], [1], [2], [0, 0, 0, 1, 1, 2], [0], [0]>} : vector<4x8x32xf32>, vector<4x32x24xf32>, vector<4x8x24xf32> -> vector<4x8x24xf32>
    %c1_80 = arith.constant 1 : index
    %c0_81 = arith.constant 0 : index
    %c0_82 = arith.constant 0 : index
    %c0_83 = arith.constant 0 : index
    %145 = vector.load %arg6[%c1_80, %c0_81, %c0_82, %c0_83] : memref<2x4x1x24xf32, #tpu.memory_space<vmem>>, vector<1x4x1x24xf32>
    %146 = vector.shape_cast %145 : vector<1x4x1x24xf32> to vector<4x1x24xf32>
    %147 = vector.broadcast %146 : vector<4x1x24xf32> to vector<4x8x24xf32>
    %148 = arith.addf %144, %147 : vector<4x8x24xf32>
    %149 = vector.extract_strided_slice %148 {offsets = [0, 0, 0], sizes = [4, 8, 8], strides = [1, 1, 1]} : vector<4x8x24xf32> to vector<4x8x8xf32>
    %150 = vector.extract_strided_slice %148 {offsets = [0, 0, 8], sizes = [4, 8, 8], strides = [1, 1, 1]} : vector<4x8x24xf32> to vector<4x8x8xf32>
    %151 = vector.extract_strided_slice %148 {offsets = [0, 0, 16], sizes = [4, 8, 8], strides = [1, 1, 1]} : vector<4x8x24xf32> to vector<4x8x8xf32>
    %cst_84 = arith.constant dense<0.000000e+00> : vector<4x8x8xf32>
    %152 = tpu.matmul %149, %150, %cst_84 {dimension_numbers = #tpu.dot_dimension_numbers<[2], [2], [1], [1], [0, 0, 0, 1, 1, 1], [0], [0]>} : vector<4x8x8xf32>, vector<4x8x8xf32>, vector<4x8x8xf32> -> vector<4x8x8xf32>
    %cst_85 = arith.constant 0.353553385 : f32
    %153 = vector.broadcast %cst_85 : f32 to vector<4x8x8xf32>
    %154 = arith.mulf %152, %153 : vector<4x8x8xf32>
    %155 = vector.broadcast %24 : vector<1x1x8xf32> to vector<4x8x8xf32>
    %156 = arith.addf %154, %155 : vector<4x8x8xf32>
    %cst_86 = arith.constant dense<0xFF800000> : vector<4x8xf32>
    %157 = vector.multi_reduction <maximumf>, %156, %cst_86 [2] : vector<4x8x8xf32> to vector<4x8xf32>
    %158 = vector.shape_cast %157 : vector<4x8xf32> to vector<4x8x1xf32>
    %159 = vector.broadcast %158 : vector<4x8x1xf32> to vector<4x8x8xf32>
    %160 = arith.subf %156, %159 : vector<4x8x8xf32>
    %161 = math.exp %160 : vector<4x8x8xf32>
    %cst_87 = arith.constant dense<0.000000e+00> : vector<4x8xf32>
    %162 = vector.multi_reduction <add>, %161, %cst_87 [2] : vector<4x8x8xf32> to vector<4x8xf32>
    %163 = vector.shape_cast %162 : vector<4x8xf32> to vector<4x8x1xf32>
    %164 = tpu.reciprocal %163 {approx = true} : vector<4x8x1xf32> -> vector<4x8x1xf32>
    %165 = vector.broadcast %164 : vector<4x8x1xf32> to vector<4x8x8xf32>
    %166 = arith.mulf %161, %165 : vector<4x8x8xf32>
    %cst_88 = arith.constant dense<0.000000e+00> : vector<4x8x8xf32>
    %167 = tpu.matmul %166, %151, %cst_88 {dimension_numbers = #tpu.dot_dimension_numbers<[2], [1], [1], [2], [0, 0, 0, 1, 1, 2], [0], [0]>} : vector<4x8x8xf32>, vector<4x8x8xf32>, vector<4x8x8xf32> -> vector<4x8x8xf32>
    %c1_89 = arith.constant 1 : index
    %c0_90 = arith.constant 0 : index
    %c0_91 = arith.constant 0 : index
    %c0_92 = arith.constant 0 : index
    %168 = vector.load %arg7[%c1_89, %c0_90, %c0_91, %c0_92] : memref<2x4x8x32xf32, #tpu.memory_space<vmem>>, vector<1x4x8x32xf32>
    %169 = vector.shape_cast %168 : vector<1x4x8x32xf32> to vector<4x8x32xf32>
    %cst_93 = arith.constant dense<0.000000e+00> : vector<4x8x32xf32>
    %170 = tpu.matmul %167, %169, %cst_93 {dimension_numbers = #tpu.dot_dimension_numbers<[2], [1], [1], [2], [0, 0, 0, 1, 1, 2], [0], [0]>} : vector<4x8x8xf32>, vector<4x8x32xf32>, vector<4x8x32xf32> -> vector<4x8x32xf32>
    %cst_94 = arith.constant dense<0.000000e+00> : vector<8x32xf32>
    %171 = vector.multi_reduction <add>, %170, %cst_94 [0] : vector<4x8x32xf32> to vector<8x32xf32>
    %c1_95 = arith.constant 1 : index
    %c0_96 = arith.constant 0 : index
    %c0_97 = arith.constant 0 : index
    %172 = vector.load %arg8[%c1_95, %c0_96, %c0_97] : memref<2x1x32xf32, #tpu.memory_space<vmem>>, vector<1x1x32xf32>
    %173 = vector.shape_cast %172 : vector<1x1x32xf32> to vector<1x32xf32>
    %174 = vector.broadcast %173 : vector<1x32xf32> to vector<8x32xf32>
    %175 = arith.addf %171, %174 : vector<8x32xf32>
    %176 = arith.addf %175, %138 : vector<8x32xf32>
    %c1_98 = arith.constant 1 : index
    %c0_99 = arith.constant 0 : index
    %c0_100 = arith.constant 0 : index
    %177 = vector.load %arg9[%c1_98, %c0_99, %c0_100] : memref<2x1x32xf32, #tpu.memory_space<vmem>>, vector<1x1x32xf32>
    %178 = vector.shape_cast %177 : vector<1x1x32xf32> to vector<1x32xf32>
    %c1_101 = arith.constant 1 : index
    %c0_102 = arith.constant 0 : index
    %c0_103 = arith.constant 0 : index
    %179 = vector.load %arg10[%c1_101, %c0_102, %c0_103] : memref<2x1x32xf32, #tpu.memory_space<vmem>>, vector<1x1x32xf32>
    %180 = vector.shape_cast %179 : vector<1x1x32xf32> to vector<1x32xf32>
    %cst_104 = arith.constant dense<0.000000e+00> : vector<8xf32>
    %181 = vector.multi_reduction <add>, %176, %cst_104 [1] : vector<8x32xf32> to vector<8xf32>
    %182 = vector.shape_cast %181 : vector<8xf32> to vector<8x1xf32>
    %cst_105 = arith.constant 3.200000e+01 : f32
    %183 = vector.broadcast %cst_105 : f32 to vector<8x1xf32>
    %184 = arith.divf %182, %183 : vector<8x1xf32>
    %185 = vector.broadcast %184 : vector<8x1xf32> to vector<8x32xf32>
    %186 = arith.subf %176, %185 : vector<8x32xf32>
    %187 = arith.mulf %186, %186 : vector<8x32xf32>
    %cst_106 = arith.constant dense<0.000000e+00> : vector<8xf32>
    %188 = vector.multi_reduction <add>, %187, %cst_106 [1] : vector<8x32xf32> to vector<8xf32>
    %189 = vector.shape_cast %188 : vector<8xf32> to vector<8x1xf32>
    %cst_107 = arith.constant 3.200000e+01 : f32
    %190 = vector.broadcast %cst_107 : f32 to vector<8x1xf32>
    %191 = arith.divf %189, %190 : vector<8x1xf32>
    %cst_108 = arith.constant 9.99999996E-13 : f32
    %192 = vector.broadcast %cst_108 : f32 to vector<8x1xf32>
    %193 = arith.addf %191, %192 : vector<8x1xf32>
    %194 = math.rsqrt %193 : vector<8x1xf32>
    %195 = vector.broadcast %194 : vector<8x1xf32> to vector<8x32xf32>
    %196 = arith.mulf %186, %195 : vector<8x32xf32>
    %197 = vector.broadcast %178 : vector<1x32xf32> to vector<8x32xf32>
    %198 = arith.mulf %196, %197 : vector<8x32xf32>
    %199 = vector.broadcast %180 : vector<1x32xf32> to vector<8x32xf32>
    %200 = arith.addf %198, %199 : vector<8x32xf32>
    %c1_109 = arith.constant 1 : index
    %c0_110 = arith.constant 0 : index
    %c0_111 = arith.constant 0 : index
    %201 = vector.load %arg11[%c1_109, %c0_110, %c0_111] : memref<2x32x64xf32, #tpu.memory_space<vmem>>, vector<1x32x64xf32>
    %202 = vector.shape_cast %201 : vector<1x32x64xf32> to vector<32x64xf32>
    %cst_112 = arith.constant dense<0.000000e+00> : vector<8x64xf32>
    %203 = tpu.matmul %200, %202, %cst_112 {dimension_numbers = #tpu.dot_dimension_numbers<[1], [0], [0], [1], [0, 0, 1, 1], [], []>} : vector<8x32xf32>, vector<32x64xf32>, vector<8x64xf32> -> vector<8x64xf32>
    %c1_113 = arith.constant 1 : index
    %c0_114 = arith.constant 0 : index
    %c0_115 = arith.constant 0 : index
    %204 = vector.load %arg12[%c1_113, %c0_114, %c0_115] : memref<2x1x64xf32, #tpu.memory_space<vmem>>, vector<1x1x64xf32>
    %205 = vector.shape_cast %204 : vector<1x1x64xf32> to vector<1x64xf32>
    %206 = vector.broadcast %205 : vector<1x64xf32> to vector<8x64xf32>
    %207 = arith.addf %203, %206 : vector<8x64xf32>
    %cst_116 = arith.constant 5.000000e-01 : f32
    %208 = vector.broadcast %cst_116 : f32 to vector<8x64xf32>
    %209 = arith.mulf %208, %207 : vector<8x64xf32>
    %cst_117 = arith.constant 4.471500e-02 : f32
    %210 = vector.broadcast %cst_117 : f32 to vector<8x64xf32>
    %211 = arith.mulf %210, %207 : vector<8x64xf32>
    %212 = arith.mulf %211, %207 : vector<8x64xf32>
    %213 = arith.mulf %212, %207 : vector<8x64xf32>
    %214 = arith.addf %207, %213 : vector<8x64xf32>
    %cst_118 = arith.constant 0.797884583 : f32
    %215 = vector.broadcast %cst_118 : f32 to vector<8x64xf32>
    %216 = arith.mulf %215, %214 : vector<8x64xf32>
    %217 = math.tanh %216 : vector<8x64xf32>
    %cst_119 = arith.constant 1.000000e+00 : f32
    %218 = vector.broadcast %cst_119 : f32 to vector<8x64xf32>
    %219 = arith.addf %218, %217 : vector<8x64xf32>
    %220 = arith.mulf %209, %219 : vector<8x64xf32>
    %c1_120 = arith.constant 1 : index
    %c0_121 = arith.constant 0 : index
    %c0_122 = arith.constant 0 : index
    %221 = vector.load %arg13[%c1_120, %c0_121, %c0_122] : memref<2x64x32xf32, #tpu.memory_space<vmem>>, vector<1x64x32xf32>
    %222 = vector.shape_cast %221 : vector<1x64x32xf32> to vector<64x32xf32>
    %cst_123 = arith.constant dense<0.000000e+00> : vector<8x32xf32>
    %223 = tpu.matmul %220, %222, %cst_123 {dimension_numbers = #tpu.dot_dimension_numbers<[1], [0], [0], [1], [0, 0, 1, 1], [], []>} : vector<8x64xf32>, vector<64x32xf32>, vector<8x32xf32> -> vector<8x32xf32>
    %c1_124 = arith.constant 1 : index
    %c0_125 = arith.constant 0 : index
    %c0_126 = arith.constant 0 : index
    %224 = vector.load %arg14[%c1_124, %c0_125, %c0_126] : memref<2x1x32xf32, #tpu.memory_space<vmem>>, vector<1x1x32xf32>
    %225 = vector.shape_cast %224 : vector<1x1x32xf32> to vector<1x32xf32>
    %226 = vector.broadcast %225 : vector<1x32xf32> to vector<8x32xf32>
    %227 = arith.addf %223, %226 : vector<8x32xf32>
    %228 = arith.addf %227, %200 : vector<8x32xf32>
    %c1_127 = arith.constant 1 : index
    %c0_128 = arith.constant 0 : index
    %c0_129 = arith.constant 0 : index
    %229 = vector.load %arg15[%c1_127, %c0_128, %c0_129] : memref<2x1x32xf32, #tpu.memory_space<vmem>>, vector<1x1x32xf32>
    %230 = vector.shape_cast %229 : vector<1x1x32xf32> to vector<1x32xf32>
    %c1_130 = arith.constant 1 : index
    %c0_131 = arith.constant 0 : index
    %c0_132 = arith.constant 0 : index
    %231 = vector.load %arg16[%c1_130, %c0_131, %c0_132] : memref<2x1x32xf32, #tpu.memory_space<vmem>>, vector<1x1x32xf32>
    %232 = vector.shape_cast %231 : vector<1x1x32xf32> to vector<1x32xf32>
    %cst_133 = arith.constant dense<0.000000e+00> : vector<8xf32>
    %233 = vector.multi_reduction <add>, %228, %cst_133 [1] : vector<8x32xf32> to vector<8xf32>
    %234 = vector.shape_cast %233 : vector<8xf32> to vector<8x1xf32>
    %cst_134 = arith.constant 3.200000e+01 : f32
    %235 = vector.broadcast %cst_134 : f32 to vector<8x1xf32>
    %236 = arith.divf %234, %235 : vector<8x1xf32>
    %237 = vector.broadcast %236 : vector<8x1xf32> to vector<8x32xf32>
    %238 = arith.subf %228, %237 : vector<8x32xf32>
    %239 = arith.mulf %238, %238 : vector<8x32xf32>
    %cst_135 = arith.constant dense<0.000000e+00> : vector<8xf32>
    %240 = vector.multi_reduction <add>, %239, %cst_135 [1] : vector<8x32xf32> to vector<8xf32>
    %241 = vector.shape_cast %240 : vector<8xf32> to vector<8x1xf32>
    %cst_136 = arith.constant 3.200000e+01 : f32
    %242 = vector.broadcast %cst_136 : f32 to vector<8x1xf32>
    %243 = arith.divf %241, %242 : vector<8x1xf32>
    %cst_137 = arith.constant 9.99999996E-13 : f32
    %244 = vector.broadcast %cst_137 : f32 to vector<8x1xf32>
    %245 = arith.addf %243, %244 : vector<8x1xf32>
    %246 = math.rsqrt %245 : vector<8x1xf32>
    %247 = vector.broadcast %246 : vector<8x1xf32> to vector<8x32xf32>
    %248 = arith.mulf %238, %247 : vector<8x32xf32>
    %249 = vector.broadcast %230 : vector<1x32xf32> to vector<8x32xf32>
    %250 = arith.mulf %248, %249 : vector<8x32xf32>
    %251 = vector.broadcast %232 : vector<1x32xf32> to vector<8x32xf32>
    %252 = arith.addf %250, %251 : vector<8x32xf32>
    %253 = vector.extract_strided_slice %252 {offsets = [0, 0], sizes = [1, 32], strides = [1, 1]} : vector<8x32xf32> to vector<1x32xf32>
    %c0_138 = arith.constant 0 : index
    %c0_139 = arith.constant 0 : index
    %254 = vector.load %arg17[%c0_138, %c0_139] : memref<32x32xf32, #tpu.memory_space<vmem>>, vector<32x32xf32>
    %cst_140 = arith.constant dense<0.000000e+00> : vector<1x32xf32>
    %255 = tpu.matmul %253, %254, %cst_140 {dimension_numbers = #tpu.dot_dimension_numbers<[1], [0], [0], [1], [0, 0, 1, 1], [], []>} : vector<1x32xf32>, vector<32x32xf32>, vector<1x32xf32> -> vector<1x32xf32>
    %c0_141 = arith.constant 0 : index
    %c0_142 = arith.constant 0 : index
    %256 = vector.load %arg18[%c0_141, %c0_142] : memref<1x32xf32, #tpu.memory_space<vmem>>, vector<1x32xf32>
    %257 = arith.addf %255, %256 : vector<1x32xf32>
    %258 = math.tanh %257 : vector<1x32xf32>
    %c0_143 = arith.constant 0 : index
    %c0_144 = arith.constant 0 : index
    %259 = vector.load %arg19[%c0_143, %c0_144] : memref<32x3xf32, #tpu.memory_space<vmem>>, vector<32x3xf32>
    %cst_145 = arith.constant dense<0.000000e+00> : vector<1x3xf32>
    %260 = tpu.matmul %258, %259, %cst_145 {dimension_numbers = #tpu.dot_dimension_numbers<[1], [0], [0], [1], [0, 0, 1, 1], [], []>} : vector<1x32xf32>, vector<32x3xf32>, vector<1x3xf32> -> vector<1x3xf32>
    %c0_146 = arith.constant 0 : index
    %c0_147 = arith.constant 0 : index
    %261 = vector.load %arg20[%c0_146, %c0_147] : memref<1x3xf32, #tpu.memory_space<vmem>>, vector<1x3xf32>
    %262 = arith.addf %260, %261 : vector<1x3xf32>
    %c0_148 = arith.constant 0 : index
    %c0_149 = arith.constant 0 : index
    %c0_150 = arith.constant 0 : index
    %263 = vector.load %arg21[%c0_148, %c0_149, %c0_150] : memref<1x1x3xf32, #tpu.memory_space<vmem>>, vector<1x1x3xf32>
    %264 = vector.shape_cast %263 : vector<1x1x3xf32> to vector<1x3xf32>
    %265 = vector.shape_cast %262 : vector<1x3xf32> to vector<1x1x3xf32>
    tpu.vector_store %arg21[%c0_148, %c0_149, %c0_150], %265 {strides = array<i32>} : memref<1x1x3xf32, #tpu.memory_space<vmem>>, vector<1x1x3xf32>,
    return
  }
  func.func @transform_0(%arg0: i32) -> (i32, i32, i32) {
    %c0_i32 = arith.constant 0 : i32
    %c0_i32_0 = arith.constant 0 : i32
    %c0_i32_1 = arith.constant 0 : i32
    return %arg0, %c0_i32, %c0_i32_0 : i32, i32, i32
  }
  func.func @transform_1(%arg0: i32) -> (i32, i32, i32) {
    %c0_i32 = arith.constant 0 : i32
    %c0_i32_0 = arith.constant 0 : i32
    %c0_i32_1 = arith.constant 0 : i32
    return %arg0, %c0_i32, %c0_i32_0 : i32, i32, i32
  }
  func.func @transform_2(%arg0: i32) -> (i32, i32) {
    %c0_i32 = arith.constant 0 : i32
    %c0_i32_0 = arith.constant 0 : i32
    %c0_i32_1 = arith.constant 0 : i32
    return %c0_i32, %c0_i32_0 : i32, i32
  }
  func.func @transform_3(%arg0: i32) -> (i32, i32) {
    %c0_i32 = arith.constant 0 : i32
    %c0_i32_0 = arith.constant 0 : i32
    %c0_i32_1 = arith.constant 0 : i32
    return %c0_i32, %c0_i32_0 : i32, i32
  }
  func.func @transform_4(%arg0: i32) -> (i32, i32, i32, i32) {
    %c0_i32 = arith.constant 0 : i32
    %c0_i32_0 = arith.constant 0 : i32
    %c0_i32_1 = arith.constant 0 : i32
    %c0_i32_2 = arith.constant 0 : i32
    %c0_i32_3 = arith.constant 0 : i32
    return %c0_i32, %c0_i32_0, %c0_i32_1, %c0_i32_2 : i32, i32, i32, i32
  }
  func.func @transform_5(%arg0: i32) -> (i32, i32, i32, i32) {
    %c0_i32 = arith.constant 0 : i32
    %c0_i32_0 = arith.constant 0 : i32
    %c0_i32_1 = arith.constant 0 : i32
    %c0_i32_2 = arith.constant 0 : i32
    %c0_i32_3 = arith.constant 0 : i32
    return %c0_i32, %c0_i32_0, %c0_i32_1, %c0_i32_2 : i32, i32, i32, i32
  }
  func.func @transform_6(%arg0: i32) -> (i32, i32, i32, i32) {
    %c0_i32 = arith.constant 0 : i32
    %c0_i32_0 = arith.constant 0 : i32
    %c0_i32_1 = arith.constant 0 : i32
    %c0_i32_2 = arith.constant 0 : i32
    %c0_i32_3 = arith.constant 0 : i32
    return %c0_i32, %c0_i32_0, %c0_i32_1, %c0_i32_2 : i32, i32, i32, i32
  }
  func.func @transform_7(%arg0: i32) -> (i32, i32, i32) {
    %c0_i32 = arith.constant 0 : i32
    %c0_i32_0 = arith.constant 0 : i32
    %c0_i32_1 = arith.constant 0 : i32
    %c0_i32_2 = arith.constant 0 : i32
    return %c0_i32, %c0_i32_0, %c0_i32_1 : i32, i32, i32
  }
  func.func @transform_8(%arg0: i32) -> (i32, i32, i32) {
    %c0_i32 = arith.constant 0 : i32
    %c0_i32_0 = arith.constant 0 : i32
    %c0_i32_1 = arith.constant 0 : i32
    %c0_i32_2 = arith.constant 0 : i32
    return %c0_i32, %c0_i32_0, %c0_i32_1 : i32, i32, i32
  }
  func.func @transform_9(%arg0: i32) -> (i32, i32, i32) {
    %c0_i32 = arith.constant 0 : i32
    %c0_i32_0 = arith.constant 0 : i32
    %c0_i32_1 = arith.constant 0 : i32
    %c0_i32_2 = arith.constant 0 : i32
    return %c0_i32, %c0_i32_0, %c0_i32_1 : i32, i32, i32
  }
  func.func @transform_10(%arg0: i32) -> (i32, i32, i32) {
    %c0_i32 = arith.constant 0 : i32
    %c0_i32_0 = arith.constant 0 : i32
    %c0_i32_1 = arith.constant 0 : i32
    %c0_i32_2 = arith.constant 0 : i32
    return %c0_i32, %c0_i32_0, %c0_i32_1 : i32, i32, i32
  }
  func.func @transform_11(%arg0: i32) -> (i32, i32, i32) {
    %c0_i32 = arith.constant 0 : i32
    %c0_i32_0 = arith.constant 0 : i32
    %c0_i32_1 = arith.constant 0 : i32
    %c0_i32_2 = arith.constant 0 : i32
    return %c0_i32, %c0_i32_0, %c0_i32_1 : i32, i32, i32
  }
  func.func @transform_12(%arg0: i32) -> (i32, i32, i32) {
    %c0_i32 = arith.constant 0 : i32
    %c0_i32_0 = arith.constant 0 : i32
    %c0_i32_1 = arith.constant 0 : i32
    %c0_i32_2 = arith.constant 0 : i32
    return %c0_i32, %c0_i32_0, %c0_i32_1 : i32, i32, i32
  }
  func.func @transform_13(%arg0: i32) -> (i32, i32, i32) {
    %c0_i32 = arith.constant 0 : i32
    %c0_i32_0 = arith.constant 0 : i32
    %c0_i32_1 = arith.constant 0 : i32
    %c0_i32_2 = arith.constant 0 : i32
    return %c0_i32, %c0_i32_0, %c0_i32_1 : i32, i32, i32
  }
  func.func @transform_14(%arg0: i32) -> (i32, i32, i32) {
    %c0_i32 = arith.constant 0 : i32
    %c0_i32_0 = arith.constant 0 : i32
    %c0_i32_1 = arith.constant 0 : i32
    %c0_i32_2 = arith.constant 0 : i32
    return %c0_i32, %c0_i32_0, %c0_i32_1 : i32, i32, i32
  }
  func.func @transform_15(%arg0: i32) -> (i32, i32, i32) {
    %c0_i32 = arith.constant 0 : i32
    %c0_i32_0 = arith.constant 0 : i32
    %c0_i32_1 = arith.constant 0 : i32
    %c0_i32_2 = arith.constant 0 : i32
    return %c0_i32, %c0_i32_0, %c0_i32_1 : i32, i32, i32
  }
  func.func @transform_16(%arg0: i32) -> (i32, i32) {
    %c0_i32 = arith.constant 0 : i32
    %c0_i32_0 = arith.constant 0 : i32
    %c0_i32_1 = arith.constant 0 : i32
    return %c0_i32, %c0_i32_0 : i32, i32
  }
  func.func @transform_17(%arg0: i32) -> (i32, i32) {
    %c0_i32 = arith.constant 0 : i32
    %c0_i32_0 = arith.constant 0 : i32
    %c0_i32_1 = arith.constant 0 : i32
    return %c0_i32, %c0_i32_0 : i32, i32
  }
  func.func @transform_18(%arg0: i32) -> (i32, i32) {
    %c0_i32 = arith.constant 0 : i32
    %c0_i32_0 = arith.constant 0 : i32
    %c0_i32_1 = arith.constant 0 : i32
    return %c0_i32, %c0_i32_0 : i32, i32
  }
  func.func @transform_19(%arg0: i32) -> (i32, i32) {
    %c0_i32 = arith.constant 0 : i32
    %c0_i32_0 = arith.constant 0 : i32
    %c0_i32_1 = arith.constant 0 : i32
    return %c0_i32, %c0_i32_0 : i32, i32
  }
  func.func @transform_20(%arg0: i32) -> (i32, i32, i32) {
    %c0_i32 = arith.constant 0 : i32
    %c0_i32_0 = arith.constant 0 : i32
    %c0_i32_1 = arith.constant 0 : i32
    return %arg0, %c0_i32, %c0_i32_0 : i32, i32, i32
  }
}

</mosaic_0001>

<bundles_post_ra>
// kernel: bert_classifier_forward.1
= control target key start
LH: loop header
LB: loop body
LE: loop exit
PB: predicated region body
PF: predicated region fallthrough
CT: control target
= control target key end

     0   :  { %s5592_s0 = inlined_call_operand.vmem [shape: f32[2,8,32], index: 0, kind: input, shape index: {}]   ;;  %s5593_s1 = inlined_call_operand.vmem [shape: f32[2,1,8], index: 1, kind: input, shape index: {}]   ;;  %s5594_s2 = inlined_call_operand.vmem [shape: f32[1,32], index: 2, kind: input, shape index: {}]   ;;  %s5595_s3 = inlined_call_operand.vmem [shape: f32[1,32], index: 3, kind: input, shape index: {}]   ;;  %s5596_s4 = inlined_call_operand.vmem [shape: f32[2,4,32,24], index: 4, kind: input, shape index: {}]   ;;  %s5597_s5 = inlined_call_operand.vmem [shape: f32[2,4,1,24], index: 5, kind: input, shape index: {}]   ;;  %s5598_s6 = inlined_call_operand.vmem [shape: f32[2,4,8,32], index: 6, kind: input, shape index: {}]   ;;  %s5599_s7 = inlined_call_operand.vmem [shape: f32[2,1,32], index: 7, kind: input, shape index: {}]   ;;  %s5600_s8 = inlined_call_operand.vmem [shape: f32[2,1,32], index: 8, kind: input, shape index: {}]   ;;  %s5601_s9 = inlined_call_operand.vmem [shape: f32[2,1,32], index: 9, kind: input, shape index: {}]   ;;  %s5602_s10 = inlined_call_operand.vmem [shape: f32[2,32,64], index: 10, kind: input, shape index: {}]   ;;  %s5603_s11 = inlined_call_operand.vmem [shape: f32[2,1,64], index: 11, kind: input, shape index: {}]   ;;  %s5604_s12 = inlined_call_operand.vmem [shape: f32[2,64,32], index: 12, kind: input, shape index: {}]   ;;  %s5605_s13 = inlined_call_operand.vmem [shape: f32[2,1,32], index: 13, kind: input, shape index: {}]   ;;  %s5606_s14 = inlined_call_operand.vmem [shape: f32[2,1,32], index: 14, kind: input, shape index: {}]   ;;  %s5607_s15 = inlined_call_operand.vmem [shape: f32[2,1,32], index: 15, kind: input, shape index: {}]   ;;  %s5608_s16 = inlined_call_operand.vmem [shape: f32[32,32], index: 16, kind: input, shape index: {}]   ;;  %s5609_s17 = inlined_call_operand.vmem [shape: f32[1,32], index: 17, kind: input, shape index: {}]   ;;  %s5610_s18 = inlined_call_operand.vmem [shape: f32[32,3], index: 18, kind: input, shape index: {}]   ;;  %s5611_s19 = inlined_call_operand.vmem [shape: f32[1,3], index: 19, kind: input, shape index: {}]   ;;  %s5612_s20 = inlined_call_operand.hbm [shape: f32[2,1,3], index: 20, kind: output, shape index: {}]  }
   0x1   :  { %5621 = sst [smem:[#allocation11_spill]] %s5592_s0 }
   0x2   :  { %5622 = sst [smem:[#allocation12_spill]] %s5593_s1 }
   0x3   :  { %5623 = sst [smem:[#allocation13_spill]] %s5594_s2 }
   0x4   :  { %5624 = sst [smem:[#allocation14_spill]] %s5595_s3 }
   0x5   :  { %5625 = sst [smem:[#allocation15_spill]] %s5596_s4 }
   0x6   :  { %5626 = sst [smem:[#allocation16_spill]] %s5611_s19 }
   0x7   :  { %5627 = sst [smem:[#allocation17_spill]] %s5612_s20 }
   0x8   :  { %25 = vsyncpa [#allocation3], 0 }
   0x9   :  { %27 = vsyncpa [#allocation3 + $0x1], 0  ;;  %s4914_s1 = smov 0   ;;  %s4916_s22 = smov 0  }
   0xa   :  { %s4918_s23 = smov 0   ;;  %s4920_s24 = smov 0  }
   0xb LB: > { %5628 = sst [smem:[#allocation5_spill]] %s4789_s1  ;;  %s4935_s2 = sadd.s32 4294967295, %s4801_s24   ;;  %s4801_s24 = sphi %s4920_s24, %s5646_s24   ;;  %s4797_s23 = sphi %s4918_s23, %s5648_s23   ;;  %s4793_s22 = sphi %s4916_s22, %s5650_s22   ;;  %s4789_s1 = sphi %s4914_s1, %s5649_s1  }
   0xc   : > { %5629 = sst [smem:[#allocation6_spill]] %s4797_s23  ;;  %s4013_s25 = sadd.s32 4294967294, %s4801_s24  }
   0xd   : > { %5630 = sst [smem:[#allocation7_spill]] %s4801_s24  ;;  %s4939_s3 = sadd.s32 1, %s4801_s24  }
   0xe   : > { %5631 = sst [smem:[#allocation8_spill]] %s4939_s3  ;;  %s470_s26 = sadd.s32 1, %s4797_s23 }
   0xf   : > { %s467_s27 = ssub.s32 %s4801_s24, %s4939_s3  ;;  %p480_p0 = scmp.ne.s32.totalorder %s4797_s23, %s4793_s22 }
  0x10   : > { %p468_p1 = scmp.eq.s32.totalorder %s467_s27, 0  ;;  %p481_p2 = scmp.eq.s32.totalorder %s4935_s2, 1 }
  0x11   : > { %p486_p3 = scmp.ne.s32.totalorder %s4793_s22, %s4789_s1  ;;  %p487_p4 = scmp.eq.s32.totalorder %s4013_s25, 1 }
  0x12   : > { %s4950_s28 = scalar_select %p468_p1, %s4797_s23, %s470_s26  }
  0x13   : > { %p4952_p5 = por %p481_p2, %p480_p0  ;;  %p4956_p6 = por %p487_p4, %p486_p3 }
  0x14   : > { %5632 = sst [smem:[#allocation9_spill]] %s4950_s28  ;;  %p4016_p7 = scmp.ge.s32.totalorder %s4801_s24, 1 }
  0x15   : > { %s5634_s29 = scalar_select %p4956_p6, 1, 0 }
  0x16   : > { %p572_p8 = scmp.lt.s32.totalorder %s4801_s24, 3 }
  0x17   : > { %5635 = sst [smem:[#allocation10_spill]] %s5634_s29 }
  0x18   : > { %p573_p9 = pnand %p4016_p7, %p572_p8 }
  0x19   : > { %p631_p10 = scmp.lt.s32.totalorder (!%p573_p9), %s4935_s2, 1  ;;  %vm641_vm0 = vcmask (!%p573_p9), 261120   ;;  %s5636_s26 = sld [smem:[#allocation11_spill]] (!%p573_p9)  ;;  %v4803_v12 = vmov (!%p573_p9), 0.0|0.0   ;;  %vm4804_vm1 = vmmov (!%p573_p9), 0   ;;  %v4805_v20 = vmov (!%p573_p9), 0.0  }
  0x1a   : > { %576 = sbr.rel (%p573_p9) target bundleno = 5580 (0x15cc), region = 100  ;;  %s5637_s3 = sld [smem:[#allocation15_spill]] (!%p573_p9)  ;;  %4551 = vmatprep.subr.bf16.mxu0 (!%p573_p9), %v4803_v12  ;;  %4557 = vmatprep.subr.bf16.mxu1 (!%p573_p9), %v4803_v12  ;;  %v4020_v42 = vld [vmem:[%s5597_s5] ss:$0 sm:$0xff] (!%p573_p9)  ;;  %v4021_v48 = vld [vmem:[%s5597_s5 + $0x1] ss:$0 sm:$0xff] (!%p573_p9) }
  0x1b   : > { %4269 = vmatprep.mubr.msk.f32.mxu0 (!%p573_p9), %vm4804_vm1, %v4805_v20  ;;  %4280 = vmatprep.mubr.msk.f32.mxu1 (!%p573_p9), %vm4804_vm1, %v4805_v20  ;;  %s5638_s23 = sld [smem:[#allocation13_spill]] (!%p573_p9)  ;;  %s5639_s1 = sld [smem:[#allocation14_spill]] (!%p573_p9)  ;;  %v4023_v50 = vld [vmem:[%s5597_s5 + $0x3] ss:$0 sm:$0xff] (!%p573_p9)  ;;  %v4022_v51 = vld [vmem:[%s5597_s5 + $0x2] ss:$0 sm:$0xff] (!%p573_p9) }
  0x1c   : > { %vm1001_vm2 = vcmask (!%p573_p9), 64512   ;;  %s5640_s19 = sld [smem:[#allocation12_spill]] (!%p573_p9)  ;;  %vm2118_vm3 = vcmask (!%p573_p9), 523264   ;;  %s629_s24 = sand.u32 (!%p573_p9), 1, %s4793_s22   ;;  %vm3934_vm4 = vcmask (!%p573_p9), 16384  }
  0x1d   : > { %s630_s25 = scalar_lea.vmem (!%p573_p9), [#allocation2], %s629_s24  ;;  %s5642_s29 = sld [smem:[#allocation17_spill]] (!%p573_p9) }
  0x20   : > { %v671_v7 = vld [vmem:[%s5637_s3] sm:$0xff] (!%p573_p9)  ;;  %v672_v8 = vld [vmem:[%s5637_s3 + $0x8] sm:$0xff] (!%p573_p9)  ;;  %v673_v14 = vld [vmem:[%s5637_s3 + $0x10] sm:$0xff] (!%p573_p9) }
  0x21   : > { %s4964_s30 = scalar_select %p631_p10, %s4935_s2, 1  ;;  %v675_v9 = vld [vmem:[%s5637_s3 + $0x20] sm:$0xff]  ;;  %v4552_v10 = vpack.c.bf16 %v672_v8, %v671_v7  ;;  %v676_v11 = vld [vmem:[%s5637_s3 + $0x28] sm:$0xff]  ;;  %v674_v15 = vld [vmem:[%s5637_s3 + $0x18] sm:$0xff] }
  0x22   : > { %v4558_v13 = vpack.c.bf16 %v676_v11, %v675_v9  ;;  %v677_v16 = vld [vmem:[%s5637_s3 + $0x30] sm:$0xff]  ;;  %v4555_v17 = vpack.c.bf16 %v674_v15, %v673_v14  ;;  %v678_v18 = vld [vmem:[%s5637_s3 + $0x38] sm:$0xff]  ;;  %v4018_v25 = vld [vmem:[%s5638_s23] ss:$0 sm:$0xff]  ;;  %s4806_s23 = smov 120  }
  0x23   : > { %s4017_s0 = sshll.u32 %s4964_s30, 3  ;;  %4553 = vmatpush3.bf16.msra.mxu0 %v4552_v10  ;;  %v4561_v19 = vpack.c.bf16 %v678_v18, %v677_v16  ;;  %v679_v26 = vld [vmem:[%s5637_s3 + $0x40] sm:$0xff]  ;;  %v680_v28 = vld [vmem:[%s5637_s3 + $0x48] sm:$0xff]  ;;  %v681_v35 = vld [vmem:[%s5637_s3 + $0x50] sm:$0xff]  ;;  %s637_s21 = scalar_lea.vmem %s5640_s19, %s4964_s30 }
  0x24   : > { %s634_s27 = scalar_lea.vmem %s5636_s26, %s4017_s0  ;;  %4559 = vmatpush3.bf16.msra.mxu1 %v4558_v13  ;;  %4554 = vmatprep.subr.bf16.mxu0 %v4803_v12  ;;  %v683_v29 = vld [vmem:[%s5637_s3 + $0x60] sm:$0xff]  ;;  %v684_v30 = vld [vmem:[%s5637_s3 + $0x68] sm:$0xff]  ;;  %v4564_v33 = vpack.c.bf16 %v680_v28, %v679_v26  ;;  %v682_v37 = vld [vmem:[%s5637_s3 + $0x58] sm:$0xff]  ;;  %s4807_s30 = smov 112  }
  0x25   : > { %v638_v0 = vld [vmem:[%s634_s27] sm:$0xff]  ;;  %4560 = vmatprep.subr.bf16.mxu1 %v4803_v12  ;;  %v4570_v34 = vpack.c.bf16 %v684_v30, %v683_v29  ;;  %v685_v38 = vld [vmem:[%s5637_s3 + $0x70] sm:$0xff]  ;;  %v686_v39 = vld [vmem:[%s5637_s3 + $0x78] sm:$0xff]  ;;  %v4567_v40 = vpack.c.bf16 %v682_v37, %v681_v35  ;;  %s5641_s19 = sld [smem:[#allocation16_spill]]  ;;  %s3949_s26 = sshll.u32 %s630_s25, 4  ;;  %s5552_s26 = int_to_ptr.vmem [resolvable:$true] %s3949_s26 }
  0x26   : > { %v642_v1 = vsel %vm641_vm0, %v638_v0, 0.0  ;;  %v4019_v31 = vld [vmem:[%s5639_s1] ss:$0 sm:$0xff]  ;;  %v4573_v41 = vpack.c.bf16 %v686_v39, %v685_v38  ;;  %s3937_s0 = scalar_lea.sflag [#allocation3], %s629_s24  ;;  %s4739_s20 = scalar_lea.vmem %s5552_s26, 16 }
  0x27   : > { %643 = vadd.xlane.f32.xlu0 %v642_v1  ;;  %4556 = vmatpush3.bf16.msra.mxu0 %v4555_v17  ;;  %v5110_v62 = vld [vmem:[%s637_s21] ss:$0 sm:$0xff]  ;;  %s4132_s21 = sshll.u32 %s4935_s2, 4  ;;  %p4740_p11 = scmp.ne.s32.totalorder %s5552_s26, %s4739_s20 }
  0x28   : > { %4562 = vmatpush3.bf16.msra.mxu1 %v4561_v19  ;;  %4563 = vmatprep.subr.bf16.mxu0 %v4803_v12  ;;  %s5550_s27 = scalar_lea.hbm %s5642_s29, %s4132_s21  ;;  %s4808_s2 = smov [#allocation2]  }
  0x29   : > { %4569 = vmatprep.subr.bf16.mxu1 %v4803_v12  ;;  %p4741_p12 = pnand %p4740_p11, %p4952_p5 }
  0x2b   : > { %p4742_p13 = pneg %p4741_p12 }
  0xb4   : > { %v644_v2 = vpop.xlane.xlu0 %643 }
  0xb5   : > { %v646_v3 = vmul.f32 0.03125, %v644_v2 }
  0xb7   : > { %v647_v4 = vsub.f32 %v638_v0, %v646_v3 }
  0xb9   : > { %v648_v5 = vmul.f32 %v647_v4, %v647_v4 }
  0xbb   : > { %v649_v6 = vsel %vm641_vm0, %v648_v5, 0.0 }
  0xbc   : > { %650 = vadd.xlane.f32.xlu0 %v649_v6 }
 0x149   : > { %v651_v21 = vpop.xlane.xlu0 %650 }
 0x14a   : > { %v652_v22 = vmul.f32 0.03125, %v651_v21 }
 0x14c   : > { %v653_v23 = vadd.f32 1e-12, %v652_v22 }
 0x14e   : > { %4691 = vrsqrt.f32 %v653_v23 }
 0x158   : > { %v4692_v24 = vpop.eup %4691 }
 0x159   : > { %v655_v27 = vmul.f32 %v4692_v24, %v647_v4 }
 0x15b   : > { %v662_v32 = vmul.f32 %v4018_v25, %v655_v27 }
 0x15d   : > { %v5027_v36 = vadd.f32 %v4019_v31, %v662_v32 }
 0x15f   : > { %4270 = vmatmul.mubr.msk.f32.vlgmr.msra.gmra.mrb[0].mxu0 %vm641_vm0, %v5027_v36  ;;  %4281 = vmatmul.mubr.msk.f32.vlgmr.msra.gmra.mrb[0].mxu1 %vm641_vm0, %v5027_v36 }
 0x160   : > { %4565 = vmatpush3.bf16.msra.mxu0 %v4564_v33  ;;  %4571 = vmatpush3.bf16.msra.mxu1 %v4570_v34 }
 0x161   : > { %4566 = vmatprep.subr.bf16.mxu0 %v4803_v12  ;;  %4572 = vmatprep.subr.bf16.mxu1 %v4803_v12 }
 0x162   : > { %4291 = vmatprep.mubr.msk.f32.mxu0 %vm4804_vm1, %v4805_v20  ;;  %4302 = vmatprep.mubr.msk.f32.mxu1 %vm4804_vm1, %v4805_v20 }
 0x164   : > { %4568 = vmatpush3.bf16.msra.mxu0 %v4567_v40  ;;  %4574 = vmatpush3.bf16.msra.mxu1 %v4573_v41 }
 0x165   : > { %4305 = vmatprep.subr.mxu1 %v4805_v20  ;;  %4315 = vmatprep.subr.mxu0 %v4805_v20 }
 0x167   : > { %4292 = vmatmul.mubr.msk.f32.vlgmr.msra.gmra.mrb[2].mxu0 %vm641_vm0, %v5027_v36  ;;  %4303 = vmatmul.mubr.msk.f32.vlgmr.msra.gmra.mrb[2].mxu1 %vm641_vm0, %v5027_v36 }
 0x168   : > { %4307 = vmatprep.mubr.msk.f32.mxu1 %vm4804_vm1, %v4805_v20  ;;  %4317 = vmatprep.mubr.msk.f32.mxu0 %vm4804_vm1, %v4805_v20 }
 0x232   : > { %v784_v43 = vpop.f32.mrb[0].mxu0  ;;  %v854_v44 = vpop.f32.mrb[0].mxu1 }
 0x233   : > { %v5061_v45 = vadd.f32 %v4020_v42, %v784_v43  ;;  %v4271_v46 = vpop.f32.mrb[1].mxu0  ;;  %v4282_v47 = vpop.f32.mrb[1].mxu1  ;;  %v855_v49 = vadd.f32 %v4021_v48, %v854_v44 }
 0x235   : > { %999 = vrot.lane.b32.xlu1 %v5061_v45, %s4806_s23 }
 0x239   : > { %1077 = vrot.lane.b32.xlu1 %v855_v49, %s4806_s23 }
 0x23a   : > { %v994_v52 = vpop.f32.mrb[2].mxu1  ;;  %v924_v53 = vpop.f32.mrb[2].mxu0 }
 0x23b   : > { %v5075_v54 = vadd.f32 %v4023_v50, %v994_v52  ;;  %v5077_v55 = vadd.f32 %v4022_v51, %v924_v53  ;;  %v4293_v56 = vpop.f32.mrb[3].mxu0  ;;  %v4304_v57 = vpop.f32.mrb[3].mxu1 }
 0x23d   : > { %1154 = vrot.lane.b32.xlu0 %v5077_v55, %s4806_s23  ;;  %1231 = vrot.lane.b32.xlu1 %v5075_v54, %s4806_s23 }
 0x2a7   : > { %v1000_v58 = vpop.permute.xlu1 %999 }
 0x2a8   : > { %4306 = vmatpush3.xpose.msk.msra.mxu1 %vm1001_vm2, %v1000_v58  ;;  %v1669_v58 = vld [vmem:[%s5598_s6] sm:$0xff] }
 0x2a9   : > { %4310 = vmatprep.subr.mxu1 %v4805_v20 }
 0x2ab   : > { %4308 = vmatmul.mubr.msk.f32.vlgmr.msra.gmra.mrb[4].mxu1 %vm1001_vm2, %v5061_v45  ;;  %v1078_v59 = vpop.permute.xlu1 %1077 }
 0x2ac   : > { %4311 = vmatpush3.xpose.msk.msra.mxu1 %vm1001_vm2, %v1078_v59  ;;  %4312 = vmatprep.mubr.msk.f32.mxu1 %vm4804_vm1, %v4805_v20  ;;  %v1670_v59 = vld [vmem:[%s5598_s6 + $0x8] sm:$0xff] }
 0x2ad   : > { %4320 = vmatprep.subr.mxu1 %v4805_v20 }
 0x2af   : > { %v1155_v60 = vpop.permute.xlu0 %1154  ;;  %4313 = vmatmul.mubr.msk.f32.vlgmr.msra.gmra.mrb[6].mxu1 %vm1001_vm2, %v855_v49  ;;  %v1232_v61 = vpop.permute.xlu1 %1231 }
 0x2b0   : > { %4316 = vmatpush3.xpose.msk.msra.mxu0 %vm1001_vm2, %v1155_v60  ;;  %4321 = vmatpush3.xpose.msk.msra.mxu1 %vm1001_vm2, %v1232_v61  ;;  %v1671_v60 = vld [vmem:[%s5598_s6 + $0x10] sm:$0xff] }
 0x2b1   : > { %4322 = vmatprep.mubr.msk.f32.mxu1 %vm4804_vm1, %v4805_v20  ;;  %4325 = vmatprep.subr.mxu0 %v4805_v20 }
 0x2b2   : > { %4330 = vmatprep.subr.mxu1 %v4805_v20 }
 0x2b3   : > { %4318 = vmatmul.mubr.msk.f32.vlgmr.msra.gmra.mrb[4].mxu0 %vm1001_vm2, %v5077_v55  ;;  %4323 = vmatmul.mubr.msk.f32.vlgmr.msra.gmra.mrb[8].mxu1 %vm1001_vm2, %v5075_v54 }
 0x2b4   : > { %4327 = vmatprep.mubr.msk.f32.mxu0 %vm4804_vm1, %v4805_v20  ;;  %4332 = vmatprep.mubr.msk.f32.mxu1 %vm4804_vm1, %v4805_v20 }
 0x37e   : > { %v1072_v63 = vpop.f32.mrb[4].mxu1 }
 0x37f   : > { %v1307_v0 = vmul.f32 0.35355338, %v1072_v63  ;;  %v4309_v1 = vpop.f32.mrb[5].mxu1 }
 0x381   : > { %v1317_v2 = vadd.f32 %v5110_v62, %v1307_v0  ;;  %v1672_v0 = vld [vmem:[%s5598_s6 + $0x18] sm:$0xff] }
 0x382   : > { %v1149_v3 = vpop.f32.mrb[6].mxu1 }
 0x383   : > { %v1308_v4 = vmul.f32 0.35355338, %v1149_v3  ;;  %v4314_v5 = vpop.f32.mrb[7].mxu1  ;;  %v1321_v6 = vsel %vm1001_vm2, %v1317_v2, -inf }
 0x384   : > { %1322 = vmax.xlane.f32.xlu1 %v1321_v6 }
 0x385   : > { %v1318_v7 = vadd.f32 %v5110_v62, %v1308_v4 }
 0x386   : > { %v1226_v8 = vpop.f32.mrb[4].mxu0  ;;  %v1303_v9 = vpop.f32.mrb[8].mxu1 }
 0x387   : > { %v1309_v10 = vmul.f32 0.35355338, %v1226_v8  ;;  %v4319_v11 = vpop.f32.mrb[5].mxu0  ;;  %v1310_v13 = vmul.f32 0.35355338, %v1303_v9  ;;  %v4324_v14 = vpop.f32.mrb[9].mxu1 }
 0x388   : > { %v1324_v15 = vsel %vm1001_vm2, %v1318_v7, -inf }
 0x389   : > { %1325 = vmax.xlane.f32.xlu0 %v1324_v15  ;;  %v1319_v16 = vadd.f32 %v5110_v62, %v1309_v10  ;;  %v1320_v18 = vadd.f32 %v5110_v62, %v1310_v13 }
 0x38b   : > { %v1327_v17 = vsel %vm1001_vm2, %v1319_v16, -inf  ;;  %v1330_v19 = vsel %vm1001_vm2, %v1320_v18, -inf }
 0x38c   : > { %1328 = vmax.xlane.f32.xlu1 %v1327_v17 }
 0x390   : > { %1331 = vmax.xlane.f32.xlu1 %v1330_v19 }
 0x39f   : > { %1365 = vrot.lane.b32.xlu0 %v5061_v45, %s4807_s30 }
 0x3a1   : > { %1441 = vrot.lane.b32.xlu1 %v855_v49, %s4807_s30 }
 0x411   : > { %v1323_v21 = vpop.xlane.xlu1 %1322 }
 0x412   : > { %v1333_v22 = vsub.f32 %v1317_v2, %v1323_v21 }
 0x414   : > { %v1337_v23 = vmul.f32 1.442695, %v1333_v22  ;;  %v4045_v22 = vld [vmem:[%s5599_s7] ss:$0 sm:$0xff] }
 0x416   : > { %4693 = vpow2.f32 %v1337_v23  ;;  %v1326_v24 = vpop.xlane.xlu0 %1325 }
 0x417   : > { %v1334_v25 = vsub.f32 %v1318_v7, %v1326_v24 }
 0x419   : > { %v1339_v26 = vmul.f32 1.442695, %v1334_v25  ;;  %v1329_v27 = vpop.xlane.xlu1 %1328 }
 0x41a   : > { %v1335_v28 = vsub.f32 %v1319_v16, %v1329_v27  ;;  %v1366_v29 = vpop.permute.xlu0 %1365 }
 0x41b   : > { %4695 = vpow2.f32 %v1339_v26  ;;  %4326 = vmatpush3.msra.mxu0 %v1366_v29 }
 0x41c   : > { %v1341_v30 = vmul.f32 1.442695, %v1335_v28  ;;  %4335 = vmatprep.subr.mxu0 %v4805_v20 }
 0x41d   : > { %v1332_v31 = vpop.xlane.xlu1 %1331 }
 0x41e   : > { %4697 = vpow2.f32 %v1341_v30  ;;  %v1336_v32 = vsub.f32 %v1320_v18, %v1332_v31 }
 0x420   : > { %v4694_v33 = vpop.eup %4693  ;;  %v1343_v34 = vmul.f32 1.442695, %v1336_v32 }
 0x421   : > { %v1442_v35 = vpop.permute.xlu1 %1441  ;;  %v1345_v37 = vsel %vm1001_vm2, %v4694_v33, 0.0 }
 0x422   : > { %4699 = vpow2.f32 %v1343_v34  ;;  %4331 = vmatpush3.msra.mxu1 %v1442_v35  ;;  %1346 = vadd.xlane.f32.xlu1 %v1345_v37  ;;  %v2011_v34 = vld [vmem:[%s5602_s10 + $0x8] sm:$0xff]  ;;  %v2013_v37 = vld [vmem:[%s5602_s10 + $0x18] sm:$0xff] }
 0x423   : > { %4340 = vmatprep.subr.mxu1 %v4805_v20 }
 0x425   : > { %v4696_v38 = vpop.eup %4695 }
 0x426   : > { %v1348_v39 = vsel %vm1001_vm2, %v4696_v38, 0.0 }
 0x427   : > { %1349 = vadd.xlane.f32.xlu1 %v1348_v39 }
 0x428   : > { %v4698_v40 = vpop.eup %4697 }
 0x429   : > { %v1351_v41 = vsel %vm1001_vm2, %v4698_v40, 0.0 }
 0x42a   : > { %1352 = vadd.xlane.f32.xlu0 %v1351_v41 }
 0x42c   : > { %v4700_v42 = vpop.eup %4699 }
 0x42d   : > { %v1354_v43 = vsel %vm1001_vm2, %v4700_v42, 0.0 }
 0x42e   : > { %1355 = vadd.xlane.f32.xlu1 %v1354_v43  ;;  %v4046_v43 = vld [vmem:[%s5600_s8] ss:$0 sm:$0xff] }
 0x43f   : > { %1517 = vrot.lane.b32.xlu1 %v5077_v55, %s4807_s30 }
 0x440   : > { %1593 = vrot.lane.b32.xlu0 %v5075_v54, %s4807_s30 }
 0x4af   : > { %v1347_v44 = vpop.xlane.xlu1 %1346 }
 0x4b0   : > { %4701 = vrcp.f32 %v1347_v44 }
 0x4b4   : > { %v1350_v45 = vpop.xlane.xlu1 %1349 }
 0x4b5   : > { %4703 = vrcp.f32 %v1350_v45  ;;  %v4047_v45 = vld [vmem:[%s5601_s9] ss:$0 sm:$0xff] }
 0x4b7   : > { %v1353_v46 = vpop.xlane.xlu0 %1352 }
 0x4b8   : > { %4705 = vrcp.f32 %v1353_v46 }
 0x4ba   : > { %v4702_v47 = vpop.eup %4701 }
 0x4bb   : > { %v1361_v48 = vmul.f32 %v4702_v47, %v4694_v33  ;;  %v1356_v49 = vpop.xlane.xlu1 %1355  ;;  %v1594_v54 = vpop.permute.xlu0 %1593  ;;  %v2010_v33 = vld [vmem:[%s5602_s10] sm:$0xff] }
 0x4bc   : > { %4707 = vrcp.f32 %v1356_v49  ;;  %v4576_v35 = vpack.c.bf16 %v2011_v34, %v2010_v33  ;;  %v2104_v49 = vld [vmem:[%s5604_s12 + $0x8] sm:$0xff]  ;;  %v4065_v33 = vld [vmem:[%s5637_s3 + $0xd8] sm:$0xff] }
 0x4bd   : > { %4328 = vmatmul.mubr.msk.f32.vlgmr.msra.gmra.mrb[6].mxu0 %vm1001_vm2, %v1361_v48  ;;  %v2103_v48 = vld [vmem:[%s5604_s12] sm:$0xff] }
 0x4be   : > { %4337 = vmatprep.mubr.msk.f32.mxu0 %vm4804_vm1, %v4805_v20 }
 0x4bf   : > { %v4704_v50 = vpop.eup %4703  ;;  %v1518_v51 = vpop.permute.xlu1 %1517 }
 0x4c0   : > { %v1362_v52 = vmul.f32 %v4704_v50, %v4696_v38  ;;  %4336 = vmatpush3.msra.mxu0 %v1518_v51  ;;  %v4582_v50 = vpack.c.bf16 %v2104_v49, %v2103_v48  ;;  %v2105_v51 = vld [vmem:[%s5604_s12 + $0x10] sm:$0xff]  ;;  %v4061_v48 = vld [vmem:[%s5637_s3 + $0xb8] sm:$0xff] }
 0x4c1   : > { %4345 = vmatprep.subr.mxu0 %v4805_v20 }
 0x4c2   : > { %v4706_v53 = vpop.eup %4705  ;;  %4333 = vmatmul.mubr.msk.f32.vlgmr.msra.gmra.mrb[10].mxu1 %vm1001_vm2, %v1362_v52  ;;  %v2106_v52 = vld [vmem:[%s5604_s12 + $0x18] sm:$0xff] }
 0x4c3   : > { %v1363_v55 = vmul.f32 %v4706_v53, %v4698_v40  ;;  %4341 = vmatpush3.msra.mxu1 %v1594_v54  ;;  %4342 = vmatprep.mubr.msk.f32.mxu1 %vm4804_vm1, %v4805_v20  ;;  %v4585_v53 = vpack.c.bf16 %v2106_v52, %v2105_v51  ;;  %v2107_v54 = vld [vmem:[%s5604_s12 + $0x20] sm:$0xff]  ;;  %v4067_v51 = vld [vmem:[%s5637_s3 + $0xe8] sm:$0xff] }
 0x4c4   : > { %4350 = vmatprep.subr.mxu1 %v4805_v20 }
 0x4c5   : > { %4338 = vmatmul.mubr.msk.f32.vlgmr.msra.gmra.mrb[8].mxu0 %vm1001_vm2, %v1363_v55  ;;  %v2108_v55 = vld [vmem:[%s5604_s12 + $0x28] sm:$0xff] }
 0x4c6   : > { %v4708_v56 = vpop.eup %4707  ;;  %4347 = vmatprep.mubr.msk.f32.mxu0 %vm4804_vm1, %v4805_v20  ;;  %4346 = vmatpush3.msra.mxu0 %v1669_v58  ;;  %v2110_v58 = vld [vmem:[%s5604_s12 + $0x38] sm:$0xff] }
 0x4c7   : > { %v1364_v57 = vmul.f32 %v4708_v56, %v4700_v42  ;;  %4355 = vmatprep.subr.mxu0 %v4805_v20  ;;  %v4588_v56 = vpack.c.bf16 %v2108_v55, %v2107_v54  ;;  %v4069_v54 = vld [vmem:[%s5637_s3 + $0xf8] sm:$0xff] }
 0x4c9   : > { %4343 = vmatmul.mubr.msk.f32.vlgmr.msra.gmra.mrb[12].mxu1 %vm1001_vm2, %v1364_v57  ;;  %v2109_v57 = vld [vmem:[%s5604_s12 + $0x30] sm:$0xff] }
 0x4ca   : > { %4352 = vmatprep.mubr.msk.f32.mxu1 %vm4804_vm1, %v4805_v20  ;;  %4351 = vmatpush3.msra.mxu1 %v1670_v59  ;;  %v4591_v59 = vpack.c.bf16 %v2110_v58, %v2109_v57 }
 0x4cb   : > { %4360 = vmatprep.subr.mxu1 %v4805_v20 }
 0x590   : > { %v1437_v61 = vpop.f32.mrb[6].mxu0 }
 0x591   : > { %v4329_v63 = vpop.f32.mrb[7].mxu0  ;;  %4348 = vmatmul.mubr.msk.f32.vlgmr.msra.gmra.mrb[10].mxu0 %vm1001_vm2, %v1437_v61 }
 0x592   : > { %4356 = vmatpush3.msra.mxu0 %v1671_v60  ;;  %4357 = vmatprep.mubr.msk.f32.mxu0 %vm4804_vm1, %v4805_v20  ;;  %v4048_v60 = vld [vmem:[%s5603_s11] ss:$0 sm:$0xff] }
 0x593   : > { %4575 = vmatprep.subr.bf16.mxu0 %v4803_v12 }
 0x595   : > { %v1513_v1 = vpop.f32.mrb[10].mxu1 }
 0x596   : > { %v4334_v2 = vpop.f32.mrb[11].mxu1  ;;  %4353 = vmatmul.mubr.msk.f32.vlgmr.msra.gmra.mrb[14].mxu1 %vm1001_vm2, %v1513_v1 }
 0x597   : > { %4361 = vmatpush3.msra.mxu1 %v1672_v0  ;;  %4362 = vmatprep.mubr.msk.f32.mxu1 %vm4804_vm1, %v4805_v20 }
 0x598   : > { %v1589_v3 = vpop.f32.mrb[8].mxu0  ;;  %4581 = vmatprep.subr.bf16.mxu1 %v4803_v12 }
 0x599   : > { %v4339_v4 = vpop.f32.mrb[9].mxu0  ;;  %4358 = vmatmul.mubr.msk.f32.vlgmr.msra.gmra.mrb[12].mxu0 %vm1001_vm2, %v1589_v3 }
 0x59a   : > { %4373 = vmatprep.mubr.msk.f32.mxu0 %vm4804_vm1, %v4805_v20  ;;  %4577 = vmatpush3.bf16.msra.mxu0 %v4576_v35 }
 0x59b   : > { %4578 = vmatprep.subr.bf16.mxu0 %v4803_v12 }
 0x59c   : > { %v1665_v5 = vpop.f32.mrb[12].mxu1 }
 0x59d   : > { %v4344_v6 = vpop.f32.mrb[13].mxu1  ;;  %4363 = vmatmul.mubr.msk.f32.vlgmr.msra.gmra.mrb[16].mxu1 %vm1001_vm2, %v1665_v5 }
 0x59e   : > { %4392 = vmatprep.mubr.msk.f32.mxu1 %vm4804_vm1, %v4805_v20  ;;  %4583 = vmatpush3.bf16.msra.mxu1 %v4582_v50  ;;  %v4066_v50 = vld [vmem:[%s5637_s3 + $0xe0] sm:$0xff] }
 0x59f   : > { %4584 = vmatprep.subr.bf16.mxu1 %v4803_v12  ;;  %v4612_v52 = vpack.c.bf16 %v4067_v51, %v4066_v50 }
 0x5a2   : > { %4586 = vmatpush3.bf16.msra.mxu1 %v4585_v53  ;;  %v4068_v53 = vld [vmem:[%s5637_s3 + $0xf0] sm:$0xff] }
 0x5a3   : > { %4587 = vmatprep.subr.bf16.mxu1 %v4803_v12  ;;  %v4615_v55 = vpack.c.bf16 %v4069_v54, %v4068_v53 }
 0x5a6   : > { %4589 = vmatpush3.bf16.msra.mxu1 %v4588_v56  ;;  %v4074_v56 = vld [vmem:[%s5597_s5 + $0x4] ss:$0 sm:$0xff] }
 0x5a7   : > { %4590 = vmatprep.subr.bf16.mxu1 %v4803_v12 }
 0x5aa   : > { %4592 = vmatpush3.bf16.msra.mxu1 %v4591_v59 }
 0x5ab   : > { %4605 = vmatprep.subr.bf16.mxu1 %v4803_v12 }
 0x664   : > { %v1742_v7 = vpop.f32.mrb[10].mxu0 }
 0x665   : > { %v4349_v8 = vpop.f32.mrb[11].mxu0  ;;  %v1965_v10 = vsel %vm641_vm0, %v1742_v7, 0.0 }
 0x669   : > { %v1815_v9 = vpop.f32.mrb[14].mxu1 }
 0x66a   : > { %v1966_v11 = vsel %vm641_vm0, %v1815_v9, 0.0  ;;  %v4354_v13 = vpop.f32.mrb[15].mxu1 }
 0x66b   : > { %v1967_v14 = vadd.f32 %v1966_v11, %v1965_v10  ;;  %v4050_v10 = vld [vmem:[%s5605_s13] ss:$0 sm:$0xff] }
 0x66c   : > { %v1888_v15 = vpop.f32.mrb[12].mxu0 }
 0x66d   : > { %v1968_v16 = vsel %vm641_vm0, %v1888_v15, 0.0  ;;  %v4359_v17 = vpop.f32.mrb[13].mxu0 }
 0x66e   : > { %v1969_v18 = vadd.f32 %v1968_v16, %v1967_v14 }
 0x670   : > { %v1961_v19 = vpop.f32.mrb[16].mxu1 }
 0x671   : > { %v1970_v21 = vsel %vm641_vm0, %v1961_v19, 0.0  ;;  %v4364_v23 = vpop.f32.mrb[17].mxu1 }
 0x672   : > { %v1971_v24 = vadd.f32 %v1970_v21, %v1969_v18  ;;  %v4054_v23 = vld [vmem:[%s5637_s3 + $0x80] sm:$0xff] }
 0x674   : > { %v1979_v25 = vadd.f32 %v4045_v22, %v1971_v24  ;;  %v4055_v24 = vld [vmem:[%s5637_s3 + $0x88] sm:$0xff] }
 0x676   : > { %v1980_v26 = vadd.f32 %v1979_v25, %v5027_v36  ;;  %v2012_v36 = vld [vmem:[%s5602_s10 + $0x10] sm:$0xff]  ;;  %v4594_v25 = vpack.c.bf16 %v4055_v24, %v4054_v23 }
 0x677   : > { %v4579_v38 = vpack.c.bf16 %v2013_v37, %v2012_v36 }
 0x678   : > { %v1983_v27 = vsel %vm641_vm0, %v1980_v26, 0.0 }
 0x679   : > { %1984 = vadd.xlane.f32.xlu1 %v1983_v27  ;;  %4580 = vmatpush3.bf16.msra.mxu0 %v4579_v38  ;;  %v4063_v27 = vld [vmem:[%s5637_s3 + $0xc8] sm:$0xff] }
 0x67a   : > { %4593 = vmatprep.subr.bf16.mxu0 %v4803_v12 }
 0x706   : > { %v1985_v28 = vpop.xlane.xlu1 %1984 }
 0x707   : > { %v1986_v29 = vmul.f32 0.03125, %v1985_v28 }
 0x709   : > { %v1987_v30 = vsub.f32 %v1980_v26, %v1986_v29  ;;  %v4062_v26 = vld [vmem:[%s5637_s3 + $0xc0] sm:$0xff]  ;;  %v4056_v29 = vld [vmem:[%s5637_s3 + $0x90] sm:$0xff] }
 0x70a   : > { %v4606_v28 = vpack.c.bf16 %v4063_v27, %v4062_v26 }
 0x70b   : > { %v1988_v31 = vmul.f32 %v1987_v30, %v1987_v30 }
 0x70d   : > { %v1989_v32 = vsel %vm641_vm0, %v1988_v31, 0.0  ;;  %v4064_v31 = vld [vmem:[%s5637_s3 + $0xd0] sm:$0xff] }
 0x70e   : > { %1990 = vadd.xlane.f32.xlu0 %v1989_v32  ;;  %v4609_v34 = vpack.c.bf16 %v4065_v33, %v4064_v31 }
 0x79b   : > { %v1991_v39 = vpop.xlane.xlu0 %1990 }
 0x79c   : > { %v1992_v40 = vmul.f32 0.03125, %v1991_v39  ;;  %v4052_v39 = vld [vmem:[%s5606_s14] ss:$0 sm:$0xff] }
 0x79e   : > { %v1993_v41 = vadd.f32 1e-12, %v1992_v40 }
 0x7a0   : > { %4709 = vrsqrt.f32 %v1993_v41  ;;  %v4058_v41 = vld [vmem:[%s5637_s3 + $0xa0] sm:$0xff] }
 0x7aa   : > { %v4710_v42 = vpop.eup %4709 }
 0x7ab   : > { %v1995_v44 = vmul.f32 %v4710_v42, %v1987_v30  ;;  %v4057_v30 = vld [vmem:[%s5637_s3 + $0x98] sm:$0xff]  ;;  %v4059_v42 = vld [vmem:[%s5637_s3 + $0xa8] sm:$0xff] }
 0x7ac   : > { %v4597_v32 = vpack.c.bf16 %v4057_v30, %v4056_v29 }
 0x7ad   : > { %v2002_v46 = vmul.f32 %v4046_v43, %v1995_v44  ;;  %v4053_v43 = vld [vmem:[%s5607_s15] ss:$0 sm:$0xff] }
 0x7af   : > { %v2009_v47 = vadd.f32 %v4047_v45, %v2002_v46  ;;  %v4600_v45 = vpack.c.bf16 %v4059_v42, %v4058_v41 }
 0x7b1   : > { %4374 = vmatmul.mubr.msk.f32.vlgmr.msra.gmra.mrb[14].mxu0 %vm641_vm0, %v2009_v47 }
 0x7b2   : > { %4403 = vmatprep.mubr.msk.f32.mxu0 %vm4804_vm1, %v4805_v20  ;;  %4595 = vmatpush3.bf16.msra.mxu0 %v4594_v25 }
 0x7b3   : > { %4596 = vmatprep.subr.bf16.mxu0 %v4803_v12 }
 0x7b6   : > { %4598 = vmatpush3.bf16.msra.mxu0 %v4597_v32 }
 0x7b7   : > { %4599 = vmatprep.subr.bf16.mxu0 %v4803_v12 }
 0x884   : > { %v2090_v61 = vpop.f32.mrb[14].mxu0 }
 0x885   : > { %v2091_v63 = vadd.f32 %v4048_v60, %v2090_v61  ;;  %v4375_v0 = vpop.f32.mrb[15].mxu0 }
 0x887   : > { %v2095_v1 = vmul.f32 0.044715, %v2091_v63  ;;  %v2094_v7 = vmul.f32 0.5, %v2091_v63 }
 0x889   : > { %v2096_v2 = vmul.f32 %v2095_v1, %v2091_v63 }
 0x88b   : > { %v2097_v3 = vmul.f32 %v2096_v2, %v2091_v63 }
 0x88d   : > { %v2098_v4 = vadd.f32 %v2097_v3, %v2091_v63  ;;  %v4075_v63 = vld [vmem:[%s5597_s5 + $0x5] ss:$0 sm:$0xff]  ;;  %v4076_v3 = vld [vmem:[%s5597_s5 + $0x6] ss:$0 sm:$0xff] }
 0x88f   : > { %v2099_v5 = vmul.f32 0.7978846, %v2098_v4 }
 0x891   : > { %4711 = vtanh.f32 %v2099_v5  ;;  %v4077_v5 = vld [vmem:[%s5597_s5 + $0x7] ss:$0 sm:$0xff] }
 0x89b   : > { %v4712_v6 = vpop.eup %4711 }
 0x89c   : > { %v2101_v8 = vadd.f32 1.0, %v4712_v6 }
 0x89e   : > { %v2102_v9 = vmul.f32 %v2101_v8, %v2094_v7 }
 0x8a0   : > { %4393 = vmatmul.mubr.msk.f32.vlgmr.msra.gmra.mrb[18].mxu1 %vm2118_vm3, %v2102_v9 }
 0x8a1   : > { %4425 = vmatprep.mubr.msk.f32.mxu1 %vm4804_vm1, %v4805_v20  ;;  %4607 = vmatpush3.bf16.msra.mxu1 %v4606_v28 }
 0x8a2   : > { %4608 = vmatprep.subr.bf16.mxu1 %v4803_v12 }
 0x8a5   : > { %4610 = vmatpush3.bf16.msra.mxu1 %v4609_v34 }
 0x8a6   : > { %4439 = vmatprep.subr.mxu1 %v4805_v20 }
 0x973   : > { %v2188_v11 = vpop.f32.mrb[18].mxu1 }
 0x974   : > { %v2189_v13 = vadd.f32 %v4050_v10, %v2188_v11  ;;  %v4394_v14 = vpop.f32.mrb[19].mxu1 }
 0x976   : > { %v2192_v15 = vadd.f32 %v2189_v13, %v2009_v47  ;;  %v4060_v47 = vld [vmem:[%s5637_s3 + $0xb0] sm:$0xff] }
 0x977   : > { %v4603_v49 = vpack.c.bf16 %v4061_v48, %v4060_v47 }
 0x978   : > { %v2195_v16 = vsel %vm641_vm0, %v2192_v15, 0.0 }
 0x979   : > { %2196 = vadd.xlane.f32.xlu0 %v2195_v16 }
 0xa06   : > { %v2197_v17 = vpop.xlane.xlu0 %2196 }
 0xa07   : > { %v2198_v18 = vmul.f32 0.03125, %v2197_v17 }
 0xa09   : > { %v2199_v19 = vsub.f32 %v2192_v15, %v2198_v18 }
 0xa0b   : > { %v2200_v21 = vmul.f32 %v2199_v19, %v2199_v19 }
 0xa0d   : > { %v2201_v22 = vsel %vm641_vm0, %v2200_v21, 0.0 }
 0xa0e   : > { %2202 = vadd.xlane.f32.xlu1 %v2201_v22 }
 0xa9b   : > { %v2203_v35 = vpop.xlane.xlu1 %2202 }
 0xa9c   : > { %v2204_v36 = vmul.f32 0.03125, %v2203_v35 }
 0xa9e   : > { %v2205_v37 = vadd.f32 1e-12, %v2204_v36 }
 0xaa0   : > { %4713 = vrsqrt.f32 %v2205_v37 }
 0xaaa   : > { %v4714_v38 = vpop.eup %4713 }
 0xaab   : > { %v2207_v40 = vmul.f32 %v4714_v38, %v2199_v19 }
 0xaad   : > { %v2214_v44 = vmul.f32 %v4052_v39, %v2207_v40 }
 0xaaf   : > { %v5287_v46 = vadd.f32 %v4053_v43, %v2214_v44 }
 0xab1   : > { %4404 = vmatmul.mubr.msk.f32.vlgmr.msra.gmra.mrb[16].mxu0 %vm641_vm0, %v5287_v46  ;;  %4426 = vmatmul.mubr.msk.f32.vlgmr.msra.gmra.mrb[20].mxu1 %vm641_vm0, %v5287_v46 }
 0xab2   : > { %4601 = vmatpush3.bf16.msra.mxu0 %v4600_v45  ;;  %4414 = vmatprep.mubr.msk.f32.mxu0 %vm4804_vm1, %v4805_v20 }
 0xab3   : > { %4602 = vmatprep.subr.bf16.mxu0 %v4803_v12  ;;  %4441 = vmatprep.mubr.msk.f32.mxu1 %vm4804_vm1, %v4805_v20 }
 0xab6   : > { %4604 = vmatpush3.bf16.msra.mxu0 %v4603_v49 }
 0xab7   : > { %4611 = vmatprep.subr.bf16.mxu0 %v4803_v12 }
 0xab9   : > { %4415 = vmatmul.mubr.msk.f32.vlgmr.msra.gmra.mrb[18].mxu0 %vm641_vm0, %v5287_v46 }
 0xaba   : > { %4613 = vmatpush3.bf16.msra.mxu0 %v4612_v52  ;;  %4436 = vmatprep.mubr.msk.f32.mxu0 %vm4804_vm1, %v4805_v20 }
 0xabb   : > { %4614 = vmatprep.subr.bf16.mxu0 %v4803_v12 }
 0xabe   : > { %4616 = vmatpush3.bf16.msra.mxu0 %v4615_v55 }
 0xabf   : > { %4449 = vmatprep.subr.mxu0 %v4805_v20 }
 0xac1   : > { %4437 = vmatmul.mubr.msk.f32.vlgmr.msra.gmra.mrb[20].mxu0 %vm641_vm0, %v5287_v46 }
 0xac2   : > { %4451 = vmatprep.mubr.msk.f32.mxu0 %vm4804_vm1, %v4805_v20 }
 0xb84   : > { %v2337_v57 = vpop.f32.mrb[16].mxu0  ;;  %v2477_v58 = vpop.f32.mrb[20].mxu1 }
 0xb85   : > { %v2338_v59 = vadd.f32 %v4074_v56, %v2337_v57  ;;  %v4405_v60 = vpop.f32.mrb[17].mxu0  ;;  %v4427_v61 = vpop.f32.mrb[21].mxu1  ;;  %v5338_v4 = vadd.f32 %v4076_v3, %v2477_v58 }
 0xb87   : > { %2552 = vrot.lane.b32.xlu0 %v2338_v59, %s4806_s23 }
 0xb8c   : > { %v2407_v0 = vpop.f32.mrb[18].mxu0 }
 0xb8d   : > { %v2408_v1 = vadd.f32 %v4075_v63, %v2407_v0  ;;  %v4416_v2 = vpop.f32.mrb[19].mxu0 }
 0xb8f   : > { %2629 = vrot.lane.b32.xlu1 %v2408_v1, %s4806_s23 }
 0xb93   : > { %2706 = vrot.lane.b32.xlu1 %v5338_v4, %s4806_s23 }
 0xb94   : > { %v2547_v6 = vpop.f32.mrb[20].mxu0 }
 0xb95   : > { %v5345_v7 = vadd.f32 %v4077_v5, %v2547_v6  ;;  %v4438_v8 = vpop.f32.mrb[21].mxu0 }
 0xb96   : > { %v4094_v8 = vld [vmem:[%s5598_s6 + $0x20] sm:$0xff] }
 0xb97   : > { %2783 = vrot.lane.b32.xlu0 %v5345_v7, %s4806_s23  ;;  %s4743_s23 = sshll.u32 %s4808_s2, 4  ;;  %s4744_s23 = int_to_ptr.vmem [resolvable:$false] %s4743_s23 }
 0xb98   : > { %p4746_p0 = scmp.lt.s32.totalorder %s5552_s26, %s4744_s23 }
 0xbf9   : > { %v2553_v9 = vpop.permute.xlu0 %2552 }
 0xbfa   : > { %4440 = vmatpush3.xpose.msk.msra.mxu1 %vm1001_vm2, %v2553_v9  ;;  %v4095_v9 = vld [vmem:[%s5598_s6 + $0x28] sm:$0xff] }
 0xbfb   : > { %4444 = vmatprep.subr.mxu1 %v4805_v20 }
 0xbfd   : > { %4442 = vmatmul.mubr.msk.f32.vlgmr.msra.gmra.mrb[22].mxu1 %vm1001_vm2, %v2338_v59 }
 0xbfe   : > { %4446 = vmatprep.mubr.msk.f32.mxu1 %vm4804_vm1, %v4805_v20 }
 0xc01   : > { %v2630_v10 = vpop.permute.xlu1 %2629 }
 0xc02   : > { %4445 = vmatpush3.xpose.msk.msra.mxu1 %vm1001_vm2, %v2630_v10  ;;  %v4096_v10 = vld [vmem:[%s5598_s6 + $0x30] sm:$0xff] }
 0xc03   : > { %4454 = vmatprep.subr.mxu1 %v4805_v20 }
 0xc05   : > { %4447 = vmatmul.mubr.msk.f32.vlgmr.msra.gmra.mrb[24].mxu1 %vm1001_vm2, %v2408_v1  ;;  %v2707_v11 = vpop.permute.xlu1 %2706 }
 0xc06   : > { %4450 = vmatpush3.xpose.msk.msra.mxu0 %vm1001_vm2, %v2707_v11  ;;  %4456 = vmatprep.mubr.msk.f32.mxu1 %vm4804_vm1, %v4805_v20 }
 0xc07   : > { %4459 = vmatprep.subr.mxu0 %v4805_v20 }
 0xc09   : > { %4452 = vmatmul.mubr.msk.f32.vlgmr.msra.gmra.mrb[22].mxu0 %vm1001_vm2, %v5338_v4  ;;  %v2784_v13 = vpop.permute.xlu0 %2783 }
 0xc0a   : > { %4455 = vmatpush3.xpose.msk.msra.mxu1 %vm1001_vm2, %v2784_v13  ;;  %4461 = vmatprep.mubr.msk.f32.mxu0 %vm4804_vm1, %v4805_v20 }
 0xc0b   : > { %4464 = vmatprep.subr.mxu1 %v4805_v20 }
 0xc0d   : > { %4457 = vmatmul.mubr.msk.f32.vlgmr.msra.gmra.mrb[26].mxu1 %vm1001_vm2, %v5345_v7 }
 0xc0e   : > { %4466 = vmatprep.mubr.msk.f32.mxu1 %vm4804_vm1, %v4805_v20 }
 0xcd0   : > { %v2624_v14 = vpop.f32.mrb[22].mxu1 }
 0xcd1   : > { %v2859_v15 = vmul.f32 0.35355338, %v2624_v14  ;;  %v4443_v16 = vpop.f32.mrb[23].mxu1  ;;  %v4097_v14 = vld [vmem:[%s5598_s6 + $0x38] sm:$0xff] }
 0xcd3   : > { %v2863_v17 = vadd.f32 %v5110_v62, %v2859_v15 }
 0xcd5   : > { %v2867_v18 = vsel %vm1001_vm2, %v2863_v17, -inf }
 0xcd6   : > { %2868 = vmax.xlane.f32.xlu1 %v2867_v18 }
 0xcd8   : > { %v2701_v19 = vpop.f32.mrb[24].mxu1 }
 0xcd9   : > { %v2860_v21 = vmul.f32 0.35355338, %v2701_v19  ;;  %v4448_v22 = vpop.f32.mrb[25].mxu1 }
 0xcdb   : > { %v2864_v23 = vadd.f32 %v5110_v62, %v2860_v21 }
 0xcdc   : > { %v2778_v24 = vpop.f32.mrb[22].mxu0 }
 0xcdd   : > { %v2861_v25 = vmul.f32 0.35355338, %v2778_v24  ;;  %v4453_v26 = vpop.f32.mrb[23].mxu0  ;;  %v2870_v27 = vsel %vm1001_vm2, %v2864_v23, -inf }
 0xcde   : > { %2871 = vmax.xlane.f32.xlu0 %v2870_v27 }
 0xcdf   : > { %v2865_v28 = vadd.f32 %v5110_v62, %v2861_v25 }
 0xce0   : > { %v2855_v29 = vpop.f32.mrb[26].mxu1 }
 0xce1   : > { %v2862_v30 = vmul.f32 0.35355338, %v2855_v29  ;;  %v4458_v31 = vpop.f32.mrb[27].mxu1  ;;  %v2873_v32 = vsel %vm1001_vm2, %v2865_v28, -inf }
 0xce2   : > { %2874 = vmax.xlane.f32.xlu0 %v2873_v32 }
 0xce3   : > { %v2866_v33 = vadd.f32 %v5110_v62, %v2862_v30 }
 0xce5   : > { %v2876_v34 = vsel %vm1001_vm2, %v2866_v33, -inf }
 0xce6   : > { %2877 = vmax.xlane.f32.xlu1 %v2876_v34 }
 0xcf7   : > { %2987 = vrot.lane.b32.xlu1 %v2408_v1, %s4807_s30 }
 0xcf8   : > { %2911 = vrot.lane.b32.xlu0 %v2338_v59, %s4807_s30 }
 0xd63   : > { %v2869_v35 = vpop.xlane.xlu1 %2868 }
 0xd64   : > { %v2879_v36 = vsub.f32 %v2863_v17, %v2869_v35  ;;  %v4103_v35 = vld [vmem:[%s5599_s7 + $0x1] ss:$0 sm:$0xff] }
 0xd66   : > { %v2883_v37 = vmul.f32 1.442695, %v2879_v36 }
 0xd68   : > { %4715 = vpow2.f32 %v2883_v37 }
 0xd6b   : > { %v2872_v38 = vpop.xlane.xlu0 %2871 }
 0xd6c   : > { %v2880_v39 = vsub.f32 %v2864_v23, %v2872_v38 }
 0xd6e   : > { %v2885_v40 = vmul.f32 1.442695, %v2880_v39 }
 0xd6f   : > { %v2875_v41 = vpop.xlane.xlu0 %2874 }
 0xd70   : > { %4717 = vpow2.f32 %v2885_v40  ;;  %v2881_v42 = vsub.f32 %v2865_v28, %v2875_v41 }
 0xd72   : > { %v4716_v43 = vpop.eup %4715  ;;  %v2887_v44 = vmul.f32 1.442695, %v2881_v42 }
 0xd73   : > { %v2878_v62 = vpop.xlane.xlu1 %2877  ;;  %v2912_v45 = vpop.permute.xlu0 %2911  ;;  %v2891_v47 = vsel %vm1001_vm2, %v4716_v43, 0.0 }
 0xd74   : > { %4719 = vpow2.f32 %v2887_v44  ;;  %v2882_v48 = vsub.f32 %v2866_v33, %v2878_v62  ;;  %4460 = vmatpush3.msra.mxu0 %v2912_v45  ;;  %2892 = vadd.xlane.f32.xlu0 %v2891_v47  ;;  %v4108_v45 = vld [vmem:[%s5602_s10 + $0x20] sm:$0xff]  ;;  %v4109_v47 = vld [vmem:[%s5602_s10 + $0x28] sm:$0xff] }
 0xd75   : > { %4469 = vmatprep.subr.mxu0 %v4805_v20 }
 0xd76   : > { %v2889_v49 = vmul.f32 1.442695, %v2882_v48  ;;  %v4618_v48 = vpack.c.bf16 %v4109_v47, %v4108_v45  ;;  %v4129_v47 = vld [vmem:[%s5607_s15 + $0x1] ss:$0 sm:$0xff] }
 0xd77   : > { %v2988_v50 = vpop.permute.xlu1 %2987 }
 0xd78   : > { %4721 = vpow2.f32 %v2889_v49  ;;  %4465 = vmatpush3.msra.mxu1 %v2988_v50  ;;  %v4111_v49 = vld [vmem:[%s5602_s10 + $0x38] sm:$0xff] }
 0xd79   : > { %4474 = vmatprep.subr.mxu1 %v4805_v20 }
 0xd7a   : > { %v4718_v51 = vpop.eup %4717 }
 0xd7b   : > { %v2894_v52 = vsel %vm1001_vm2, %v4718_v51, 0.0 }
 0xd7c   : > { %2895 = vadd.xlane.f32.xlu1 %v2894_v52 }
 0xd7e   : > { %v4720_v53 = vpop.eup %4719 }
 0xd7f   : > { %v2897_v54 = vsel %vm1001_vm2, %v4720_v53, 0.0 }
 0xd80   : > { %2898 = vadd.xlane.f32.xlu0 %v2897_v54 }
 0xd82   : > { %v4722_v55 = vpop.eup %4721 }
 0xd83   : > { %v2900_v56 = vsel %vm1001_vm2, %v4722_v55, 0.0 }
 0xd84   : > { %2901 = vadd.xlane.f32.xlu1 %v2900_v56 }
 0xd95   : > { %3063 = vrot.lane.b32.xlu1 %v5338_v4, %s4807_s30 }
 0xd96   : > { %3139 = vrot.lane.b32.xlu0 %v5345_v7, %s4807_s30  ;;  %s4745_s30 = scalar_lea.vmem %s4744_s23, 32 }
 0xd97   : > { %p4747_p1 = scmp.lt.s32.totalorder %s4745_s30, %s4739_s20 }
 0xd99   : > { %p4748_p2 = por %p4747_p1, %p4746_p0 }
 0xd9b   : > { %p4749_p3 = pnand %p4748_p2, %p4742_p13 }
 0xe01   : > { %v2893_v57 = vpop.xlane.xlu0 %2892 }
 0xe02   : > { %4723 = vrcp.f32 %v2893_v57  ;;  %v4107_v57 = vld [vmem:[%s5601_s9 + $0x1] ss:$0 sm:$0xff] }
 0xe09   : > { %v2896_v58 = vpop.xlane.xlu1 %2895 }
 0xe0a   : > { %4725 = vrcp.f32 %v2896_v58 }
 0xe0c   : > { %v4724_v59 = vpop.eup %4723 }
 0xe0d   : > { %v2907_v60 = vmul.f32 %v4724_v59, %v4716_v43  ;;  %v2899_v61 = vpop.xlane.xlu0 %2898 }
 0xe0e   : > { %4727 = vrcp.f32 %v2899_v61  ;;  %v4116_v61 = vld [vmem:[%s5604_s12 + $0x48] sm:$0xff] }
 0xe0f   : > { %4462 = vmatmul.mubr.msk.f32.vlgmr.msra.gmra.mrb[24].mxu0 %vm1001_vm2, %v2907_v60  ;;  %v4115_v60 = vld [vmem:[%s5604_s12 + $0x40] sm:$0xff] }
 0xe10   : > { %4471 = vmatprep.mubr.msk.f32.mxu0 %vm4804_vm1, %v4805_v20 }
 0xe11   : > { %v2902_v63 = vpop.xlane.xlu1 %2901  ;;  %v3140_v3 = vpop.permute.xlu0 %3139 }
 0xe12   : > { %4729 = vrcp.f32 %v2902_v63  ;;  %v4624_v63 = vpack.c.bf16 %v4116_v61, %v4115_v60 }
 0xe14   : > { %v4726_v0 = vpop.eup %4725 }
 0xe15   : > { %v2908_v1 = vmul.f32 %v4726_v0, %v4718_v51  ;;  %v3064_v2 = vpop.permute.xlu1 %3063  ;;  %v4117_v0 = vld [vmem:[%s5604_s12 + $0x50] sm:$0xff] }
 0xe16   : > { %4470 = vmatpush3.msra.mxu0 %v3064_v2 }
 0xe17   : > { %4467 = vmatmul.mubr.msk.f32.vlgmr.msra.gmra.mrb[28].mxu1 %vm1001_vm2, %v2908_v1  ;;  %4479 = vmatprep.subr.mxu0 %v4805_v20  ;;  %v4118_v1 = vld [vmem:[%s5604_s12 + $0x58] sm:$0xff] }
 0xe18   : > { %v4728_v4 = vpop.eup %4727  ;;  %4475 = vmatpush3.msra.mxu1 %v3140_v3  ;;  %4476 = vmatprep.mubr.msk.f32.mxu1 %vm4804_vm1, %v4805_v20  ;;  %v4627_v2 = vpack.c.bf16 %v4118_v1, %v4117_v0  ;;  %v4119_v3 = vld [vmem:[%s5604_s12 + $0x60] sm:$0xff] }
 0xe19   : > { %v2909_v5 = vmul.f32 %v4728_v4, %v4720_v53  ;;  %4484 = vmatprep.subr.mxu1 %v4805_v20  ;;  %v4120_v4 = vld [vmem:[%s5604_s12 + $0x68] sm:$0xff] }
 0xe1b   : > { %4472 = vmatmul.mubr.msk.f32.vlgmr.msra.gmra.mrb[26].mxu0 %vm1001_vm2, %v2909_v5  ;;  %v4630_v5 = vpack.c.bf16 %v4120_v4, %v4119_v3 }
 0xe1c   : > { %v4730_v6 = vpop.eup %4729  ;;  %4481 = vmatprep.mubr.msk.f32.mxu0 %vm4804_vm1, %v4805_v20  ;;  %4480 = vmatpush3.msra.mxu0 %v4094_v8 }
 0xe1d   : > { %v2910_v7 = vmul.f32 %v4730_v6, %v4722_v55  ;;  %4489 = vmatprep.subr.mxu0 %v4805_v20  ;;  %v4106_v55 = vld [vmem:[%s5600_s8 + $0x1] ss:$0 sm:$0xff]  ;;  %v4121_v6 = vld [vmem:[%s5604_s12 + $0x70] sm:$0xff] }
 0xe1f   : > { %4477 = vmatmul.mubr.msk.f32.vlgmr.msra.gmra.mrb[30].mxu1 %vm1001_vm2, %v2910_v7  ;;  %v4122_v7 = vld [vmem:[%s5604_s12 + $0x78] sm:$0xff] }
 0xe20   : > { %4486 = vmatprep.mubr.msk.f32.mxu1 %vm4804_vm1, %v4805_v20  ;;  %4485 = vmatpush3.msra.mxu1 %v4095_v9  ;;  %v4633_v8 = vpack.c.bf16 %v4122_v7, %v4121_v6  ;;  %v4113_v9 = vld [vmem:[%s5603_s11 + $0x1] ss:$0 sm:$0xff] }
 0xe21   : > { %4494 = vmatprep.subr.mxu1 %v4805_v20 }
 0xee2   : > { %v2983_v11 = vpop.f32.mrb[24].mxu0 }
 0xee3   : > { %v4463_v13 = vpop.f32.mrb[25].mxu0  ;;  %4482 = vmatmul.mubr.msk.f32.vlgmr.msra.gmra.mrb[28].mxu0 %vm1001_vm2, %v2983_v11 }
 0xee4   : > { %4490 = vmatpush3.msra.mxu0 %v4096_v10  ;;  %4491 = vmatprep.mubr.msk.f32.mxu0 %vm4804_vm1, %v4805_v20 }
 0xee5   : > { %4617 = vmatprep.subr.bf16.mxu0 %v4803_v12 }
 0xeea   : > { %v3059_v15 = vpop.f32.mrb[28].mxu1 }
 0xeeb   : > { %v4468_v16 = vpop.f32.mrb[29].mxu1  ;;  %4487 = vmatmul.mubr.msk.f32.vlgmr.msra.gmra.mrb[32].mxu1 %vm1001_vm2, %v3059_v15 }
 0xeec   : > { %4495 = vmatpush3.msra.mxu1 %v4097_v14  ;;  %4496 = vmatprep.mubr.msk.f32.mxu1 %vm4804_vm1, %v4805_v20 }
 0xeed   : > { %4623 = vmatprep.subr.bf16.mxu1 %v4803_v12 }
 0xeee   : > { %v3135_v17 = vpop.f32.mrb[26].mxu0 }
 0xeef   : > { %v4473_v18 = vpop.f32.mrb[27].mxu0  ;;  %4492 = vmatmul.mubr.msk.f32.vlgmr.msra.gmra.mrb[30].mxu0 %vm1001_vm2, %v3135_v17 }
 0xef0   : > { %4507 = vmatprep.mubr.msk.f32.mxu0 %vm4804_vm1, %v4805_v20  ;;  %4619 = vmatpush3.bf16.msra.mxu0 %v4618_v48 }
 0xef1   : > { %4620 = vmatprep.subr.bf16.mxu0 %v4803_v12 }
 0xef2   : > { %v3211_v19 = vpop.f32.mrb[30].mxu1 }
 0xef3   : > { %v4478_v21 = vpop.f32.mrb[31].mxu1  ;;  %4497 = vmatmul.mubr.msk.f32.vlgmr.msra.gmra.mrb[34].mxu1 %vm1001_vm2, %v3211_v19 }
 0xef4   : > { %4526 = vmatprep.mubr.msk.f32.mxu1 %vm4804_vm1, %v4805_v20  ;;  %4625 = vmatpush3.bf16.msra.mxu1 %v4624_v63 }
 0xef5   : > { %4626 = vmatprep.subr.bf16.mxu1 %v4803_v12 }
 0xef8   : > { %4628 = vmatpush3.bf16.msra.mxu1 %v4627_v2 }
 0xef9   : > { %4629 = vmatprep.subr.bf16.mxu1 %v4803_v12 }
 0xefc   : > { %4631 = vmatpush3.bf16.msra.mxu1 %v4630_v5 }
 0xefd   : > { %4632 = vmatprep.subr.bf16.mxu1 %v4803_v12 }
 0xf00   : > { %4634 = vmatpush3.bf16.msra.mxu1 %v4633_v8 }
 0xfb6   : > { %v3289_v22 = vpop.f32.mrb[28].mxu0 }
 0xfb7   : > { %v4483_v23 = vpop.f32.mrb[29].mxu0  ;;  %v3512_v25 = vsel %vm641_vm0, %v3289_v22, 0.0 }
 0xfbe   : > { %v3362_v24 = vpop.f32.mrb[32].mxu1 }
 0xfbf   : > { %v3513_v26 = vsel %vm641_vm0, %v3362_v24, 0.0  ;;  %v4488_v27 = vpop.f32.mrb[33].mxu1  ;;  %v4124_v24 = vld [vmem:[%s5605_s13 + $0x1] ss:$0 sm:$0xff] }
 0xfc0   : > { %v3514_v28 = vadd.f32 %v3513_v26, %v3512_v25 }
 0xfc2   : > { %v3435_v29 = vpop.f32.mrb[30].mxu0 }
 0xfc3   : > { %v3515_v30 = vsel %vm641_vm0, %v3435_v29, 0.0  ;;  %v4493_v31 = vpop.f32.mrb[31].mxu0 }
 0xfc4   : > { %v3516_v32 = vadd.f32 %v3515_v30, %v3514_v28 }
 0xfc6   : > { %v3508_v33 = vpop.f32.mrb[34].mxu1 }
 0xfc7   : > { %v3517_v34 = vsel %vm641_vm0, %v3508_v33, 0.0  ;;  %v4498_v36 = vpop.f32.mrb[35].mxu1 }
 0xfc8   : > { %v3518_v37 = vadd.f32 %v3517_v34, %v3516_v32  ;;  %v3778_v36 = vld [vmem:[%s5608_s16 + $0x8] sm:$0xff] }
 0xfca   : > { %v3527_v38 = vadd.f32 %v4103_v35, %v3518_v37  ;;  %v3777_v35 = vld [vmem:[%s5608_s16] sm:$0xff] }
 0xfcb   : > { %v4636_v37 = vpack.c.bf16 %v3778_v36, %v3777_v35 }
 0xfcc   : > { %v3528_v39 = vadd.f32 %v3527_v38, %v5287_v46  ;;  %v4110_v46 = vld [vmem:[%s5602_s10 + $0x30] sm:$0xff] }
 0xfcd   : > { %v4621_v50 = vpack.c.bf16 %v4111_v49, %v4110_v46  ;;  %v3779_v38 = vld [vmem:[%s5608_s16 + $0x10] sm:$0xff]  ;;  %v3856_v49 = vld [vmem:[%s5610_s18] sm:$0xff] }
 0xfce   : > { %v3533_v40 = vsel %vm641_vm0, %v3528_v39, 0.0 }
 0xfcf   : > { %3534 = vadd.xlane.f32.xlu1 %v3533_v40  ;;  %4622 = vmatpush3.bf16.msra.mxu0 %v4621_v50  ;;  %v3857_v50 = vld [vmem:[%s5610_s18 + $0x8] sm:$0xff] }
 0xfd0   : > { %4635 = vmatprep.subr.bf16.mxu0 %v4803_v12 }
0x105c   : > { %v3535_v41 = vpop.xlane.xlu1 %3534 }
0x105d   : > { %v3536_v42 = vmul.f32 0.03125, %v3535_v41 }
0x105f   : > { %v3537_v43 = vsub.f32 %v3528_v39, %v3536_v42  ;;  %v3780_v39 = vld [vmem:[%s5608_s16 + $0x18] sm:$0xff] }
0x1060   : > { %v4639_v40 = vpack.c.bf16 %v3780_v39, %v3779_v38 }
0x1061   : > { %v3538_v44 = vmul.f32 %v3537_v43, %v3537_v43 }
0x1063   : > { %v3539_v62 = vsel %vm641_vm0, %v3538_v44, 0.0 }
0x1064   : > { %3540 = vadd.xlane.f32.xlu0 %v3539_v62  ;;  %v4128_v62 = vld [vmem:[%s5606_s14 + $0x1] ss:$0 sm:$0xff] }
0x10f1   : > { %v3541_v51 = vpop.xlane.xlu0 %3540 }
0x10f2   : > { %v3542_v52 = vmul.f32 0.03125, %v3541_v51  ;;  %v3858_v51 = vld [vmem:[%s5610_s18 + $0x10] sm:$0xff] }
0x10f4   : > { %v3543_v53 = vadd.f32 1e-12, %v3542_v52  ;;  %v4642_v52 = vpack.c.bf16 %v3857_v50, %v3856_v49 }
0x10f6   : > { %4731 = vrsqrt.f32 %v3543_v53  ;;  %v3859_v53 = vld [vmem:[%s5610_s18 + $0x18] sm:$0xff] }
0x1100   : > { %v4732_v54 = vpop.eup %4731 }
0x1101   : > { %v3545_v56 = vmul.f32 %v4732_v54, %v3537_v43  ;;  %v3781_v54 = vld [vmem:[%s5609_s17] sm:$0x1] }
0x1103   : > { %v3552_v58 = vmul.f32 %v4106_v55, %v3545_v56 }
0x1105   : > { %v3559_v59 = vadd.f32 %v4107_v57, %v3552_v58 }
0x1107   : > { %4508 = vmatmul.mubr.msk.f32.vlgmr.msra.gmra.mrb[32].mxu0 %vm641_vm0, %v3559_v59 }
0x1108   : > { %4537 = vmatprep.mubr.msk.f32.mxu0 %vm4804_vm1, %v4805_v20  ;;  %4637 = vmatpush3.bf16.msra.mxu0 %v4636_v37 }
0x1109   : > { %4638 = vmatprep.subr.bf16.mxu0 %v4803_v12 }
0x110c   : > { %4640 = vmatpush3.bf16.msra.mxu0 %v4639_v40 }
0x110d   : > { %4641 = vmatprep.subr.bf16.mxu0 %v4803_v12 }
0x11da   : > { %v3642_v10 = vpop.f32.mrb[32].mxu0 }
0x11db   : > { %v3643_v11 = vadd.f32 %v4113_v9, %v3642_v10  ;;  %v4509_v13 = vpop.f32.mrb[33].mxu0 }
0x11dd   : > { %v3647_v14 = vmul.f32 0.044715, %v3643_v11  ;;  %v3646_v21 = vmul.f32 0.5, %v3643_v11 }
0x11df   : > { %v3648_v15 = vmul.f32 %v3647_v14, %v3643_v11 }
0x11e1   : > { %v3649_v16 = vmul.f32 %v3648_v15, %v3643_v11 }
0x11e3   : > { %v3650_v17 = vadd.f32 %v3649_v16, %v3643_v11 }
0x11e5   : > { %v3651_v18 = vmul.f32 0.7978846, %v3650_v17 }
0x11e7   : > { %4733 = vtanh.f32 %v3651_v18 }
0x11f1   : > { %v4734_v19 = vpop.eup %4733 }
0x11f2   : > { %v3653_v22 = vadd.f32 1.0, %v4734_v19 }
0x11f4   : > { %v3654_v23 = vmul.f32 %v3653_v22, %v3646_v21 }
0x11f6   : > { %4527 = vmatmul.mubr.msk.f32.vlgmr.msra.gmra.mrb[36].mxu1 %vm2118_vm3, %v3654_v23 }
0x12c9   : > { %v3741_v25 = vpop.f32.mrb[36].mxu1 }
0x12ca   : > { %v3742_v26 = vadd.f32 %v4124_v24, %v3741_v25  ;;  %v4528_v27 = vpop.f32.mrb[37].mxu1 }
0x12cc   : > { %v3745_v28 = vadd.f32 %v3742_v26, %v3559_v59  ;;  %v3860_v59 = vld [vmem:[%s5641_s19] sm:$0x1] }
0x12ce   : > { %v3750_v29 = vsel %vm641_vm0, %v3745_v28, 0.0 }
0x12cf   : > { %3751 = vadd.xlane.f32.xlu0 %v3750_v29 }
0x135c   : > { %v3752_v30 = vpop.xlane.xlu0 %3751 }
0x135d   : > { %v3753_v31 = vmul.f32 0.03125, %v3752_v30 }
0x135f   : > { %v3754_v32 = vsub.f32 %v3745_v28, %v3753_v31 }
0x1361   : > { %v3755_v33 = vmul.f32 %v3754_v32, %v3754_v32 }
0x1363   : > { %v3756_v34 = vsel %vm641_vm0, %v3755_v33, 0.0 }
0x1364   : > { %3757 = vadd.xlane.f32.xlu1 %v3756_v34 }
0x13f1   : > { %v3758_v41 = vpop.xlane.xlu1 %3757 }
0x13f2   : > { %v3759_v42 = vmul.f32 0.03125, %v3758_v41 }
0x13f4   : > { %v3760_v43 = vadd.f32 1e-12, %v3759_v42 }
0x13f6   : > { %4735 = vrsqrt.f32 %v3760_v43 }
0x1400   : > { %v4736_v44 = vpop.eup %4735 }
0x1401   : > { %v3762_v45 = vmul.f32 %v4736_v44, %v3754_v32 }
0x1403   : > { %v3769_v48 = vmul.f32 %v4128_v62, %v3762_v45 }
0x1405   : > { %v3776_v46 = vadd.f32 %v4129_v47, %v3769_v48 }
0x1407   : > { %4538 = vmatmul.mubr.msk.f32.vlgmr.msra.gmra.mrb[34].mxu0 %vm641_vm0, %v3776_v46 }
0x1408   : > { %4548 = vmatprep.mubr.msk.f32.mxu0 %vm4804_vm1, %v4805_v20  ;;  %4643 = vmatpush3.bf16.msra.mxu0 %v4642_v52  ;;  %v4645_v20 = vpack.c.bf16 %v3859_v53, %v3858_v51 }
0x1409   : > { %4644 = vmatprep.subr.bf16.mxu0 %v4803_v12 }
0x140c   : > { %4646 = vmatpush3.bf16.msra.mxu0 %v4645_v20 }
0x14da   : > { %v3851_v55 = vpop.f32.mrb[34].mxu0 }
0x14db   : > { %v3852_v56 = vadd.f32 %v3851_v55, %v3781_v54  ;;  %v4539_v57 = vpop.f32.mrb[35].mxu0 }
0x14dd   : > { %4737 = vtanh.f32 %v3852_v56 }
0x14e7   : > { %v4738_v58 = vpop.eup %4737 }
0x14e8   : > { %4549 = vmatmul.mubr.msk.f32.vlgmr.msra.gmra.mrb[36].mxu0 %vm641_vm0, %v4738_v58 }
0x15bb   : > { %v3930_v12 = vpop.f32.mrb[36].mxu0 }
0x15bc   : > { %v3931_v60 = vadd.f32 %v3930_v12, %v3860_v59  ;;  %v4550_v61 = vpop.f32.mrb[37].mxu0 }
0x15be   : > { %3935 = vst.msk [vmem:[%s630_s25] sm:$0x1] %vm3934_vm4, %v3931_v60 }
0x15bf   : > { %4752 = shalt.err (!%p4749_p3)
}
0x15c0   : > { %s4753_s24 = scalar_lea.hbm %s5550_s27, 16  ;;  %s4757_s25 = scalar_lea.hbm %s5642_s29, 32 }
0x15c1   : > { %p4754_p4 = scmp.ne.s32.totalorder %s5550_s27, %s4753_s24  ;;  %p4758_p9 = scmp.lt.u32.totalorder %s5550_s27, %s5642_s29 }
0x15c2   : > { %p4759_p10 = scmp.lt.u32.totalorder %s4757_s25, %s4753_s24  ;;  %p4761_p12 = scmp.lt.u32.totalorder %s4753_s24, %s5550_s27 }
0x15c3   : > { %p4755_p7 = pnand %p4754_p4, %p4952_p5 }
0x15c4   : > { %p4760_p11 = por %p4759_p10, %p4758_p9 }
0x15c5   : > { %p4756_p8 = pneg %p4755_p7 }
0x15c6   : > { %p4762_p13 = por %p4761_p12, %p4760_p11 }
0x15c8   : > { %p4763_p0 = pnand %p4762_p13, %p4756_p8 }
0x15ca   : > { %4766 = shalt.err (!%p4763_p0)
}
0x15cb   : > { %4647 = dma.vmem_to_hbm [thread:$0]  (%p4952_p5), %s5552_s26, 16, %s5550_s27, %s3937_s0  }
0x15cc PF: > { %s5643_s20 = sld [smem:[#allocation7_spill]]  ;;  %s5644_s2 = sld [smem:[#allocation5_spill]] }
0x15d2   : > { %p4653_p1 = scmp.ge.s32.totalorder %s5643_s20, 2  ;;  %s3961_s30 = sand.u32 1, %s5644_s2  }
0x15d3   : > { %s3962_s19 = scalar_lea.sflag [#allocation3], %s3961_s30 }
0x15d4   : > { %p4650_p2 = pnand %p4653_p1, %p4956_p6 }
0x15d6   : > { %4784 = dma.done.wait (!%p4650_p2), %s3962_s19, 16  }
0x15d7   : > { %4786 = vsyncadd (!%p4650_p2), %s3962_s19, 4294967280  ;;  %s5646_s24 = sld [smem:[#allocation8_spill]]  ;;  %s5647_s21 = sld [smem:[#allocation6_spill]] }
0x15d8   : > { %s5648_s23 = sld [smem:[#allocation9_spill]]  ;;  %s5649_s1 = smov %s4793_s22 }
0x15dd   : > { %p30_p3 = scmp.ge.s32.totalorder %s5646_s24, 4   ;;  %s5650_s22 = smov %s5647_s21 }
0x15df   :  { %32 = sbr.rel (!%p30_p3) target bundleno = 11 (0xb), region = 150 }
0x15e6   :  { %3966 = vsyncpa [#allocation3], 1 }
0x15e7   :  { %3968 = vsyncpa [#allocation3 + $0x1], 1 }

</bundles_post_ra>
